<compile_context>
chip_gen: v6e
topology: v6e:2x2x1
jax: 0.10.0
libtpu: 0.0.40
codegen_flags: <defaults>
</compile_context>

<pallas_src>
import functools

import jax
import jax.numpy as jnp
import numpy as np
from jax.experimental import pallas as pl
from jax.experimental.pallas import tpu as pltpu


# ----------------------------- Pallas kernels ------------------------------

def _mm_bias_kernel(x_ref, w_ref, b_ref, o_ref, *, relu):
    # out = relu?( (x @ w) + bias )  -- BN scale already folded into w columns.
    acc = jnp.dot(x_ref[...], w_ref[...], preferred_element_type=jnp.float32)
    acc = acc + b_ref[...]
    if relu:
        acc = jnp.maximum(acc, 0.0)
    o_ref[...] = acc.astype(o_ref.dtype)


def _mm_bias_res_relu_kernel(x_ref, w_ref, b_ref, r_ref, o_ref):
    # out = relu( (x @ w) + bias + residual )
    acc = jnp.dot(x_ref[...], w_ref[...], preferred_element_type=jnp.float32)
    acc = acc + b_ref[...] + r_ref[...].astype(jnp.float32)
    o_ref[...] = jnp.maximum(acc, 0.0).astype(o_ref.dtype)


def _round_up(v, m):
    return ((v + m - 1) // m) * m


def _row_tile(m):
    # Largest row tile that still keeps >=2 grid steps (megacore sharding /
    # double-buffering) with a sublane-aligned (multiple-of-8) block.
    if m >= 1024:
        return 512
    if m >= 512:
        return 256
    if m >= 256:
        return 128
    if m >= 128:
        return 64
    return max(8, _round_up(m, 8))


def fused_matmul_bias(x2d, w, bias, residual=None, relu=True,
                      out_dtype=jnp.bfloat16):
    """relu?((x2d @ w) + bias [+ residual]); bf16 MXU matmul tiled over rows."""
    M, K = x2d.shape
    Kw, C = w.shape
    assert K == Kw
    assert C % 128 == 0, "output channels must be lane-dense (padded to 128)"

    tm = _row_tile(M)
    Mp = _round_up(M, tm)
    if Mp != M:  # pad rows so the grid tiles evenly (extra rows sliced off)
        x2d = jnp.pad(x2d, ((0, Mp - M), (0, 0)))
        if residual is not None:
            residual = jnp.pad(residual, ((0, Mp - M), (0, 0)))
    grid = (Mp // tm,)

    args = [x2d.astype(jnp.bfloat16), w.astype(jnp.bfloat16),
            bias.reshape(1, C).astype(jnp.float32)]
    in_specs = [
        pl.BlockSpec((tm, K), lambda i: (i, 0)),
        pl.BlockSpec((K, C), lambda i: (0, 0)),
        pl.BlockSpec((1, C), lambda i: (0, 0)),
    ]
    if residual is None:
        kernel = functools.partial(_mm_bias_kernel, relu=relu)
        res_bytes = 0
    else:
        kernel = _mm_bias_res_relu_kernel
        in_specs.append(pl.BlockSpec((tm, C), lambda i: (i, 0)))
        args.append(residual.astype(jnp.bfloat16))
        res_bytes = tm * C * 2

    # Rough VMEM budget: double-buffered x/residual/output tiles + weight/bias.
    est = 2 * (tm * K * 2 + res_bytes + tm * C * np.dtype(out_dtype).itemsize
               + K * C * 2 + C * 4)
    vmem_limit = int(min(64 * 2**20, max(32 * 2**20, 2 * est)))

    out = pl.pallas_call(
        kernel,
        out_shape=jax.ShapeDtypeStruct((Mp, C), out_dtype),
        grid=grid,
        in_specs=in_specs,
        out_specs=pl.BlockSpec((tm, C), lambda i: (i, 0)),
        compiler_params=pltpu.CompilerParams(
            dimension_semantics=("parallel",),
            vmem_limit_bytes=vmem_limit),
    )(*args)
    return out[:M] if Mp != M else out


# ------------------------------- glue (JAX) --------------------------------

def _bn_fold(gamma, beta, mean, var, eps=1e-5):
    # TODO(synk): BatchNorm2d uses running statistics (eval mode); PyTorch
    # training-mode batch statistics are not computed.
    scale = gamma / jnp.sqrt(var + eps)
    return scale, beta - mean * scale


def _fold_bn_into_weight(w, bn):
    # Fold the BN scale into the conv weight output-channel columns so the
    # Pallas epilogue only needs a bias add (saves one VPU multiply per tile).
    scale, bias = _bn_fold(*bn)
    return w * scale, bias


def _pad_channels(a, target):
    c = a.shape[-1]
    if c == target:
        return a
    pad = [(0, 0)] * (a.ndim - 1) + [(0, target - c)]
    return jnp.pad(a, pad)


def _im2col_3x3(x_nhwc, stride):
    """3x3 patches (pad=1, given stride) -> [N*Ho*Wo, 9*C] (bf16, XLA-side).

    TODO(synk): fuse the 9-tap accumulation into the conv2 Pallas kernel (grid
    reduction axis over taps) to avoid materializing the 9x patch tensor in HBM.
    """
    N, H, W, C = x_nhwc.shape
    Ho = (H + 2 - 3) // stride + 1
    Wo = (W + 2 - 3) // stride + 1
    xp = jnp.pad(x_nhwc, ((0, 0), (1, 1), (1, 1), (0, 0)))
    cols = []
    for kh in range(3):
        for kw in range(3):
            cols.append(
                xp[:, kh:kh + (Ho - 1) * stride + 1:stride,
                      kw:kw + (Wo - 1) * stride + 1:stride, :])
    patches = jnp.concatenate(cols, axis=-1)  # [N, Ho, Wo, 9*C] (kh, kw, c)
    return patches.reshape(N * Ho * Wo, 9 * C), Ho, Wo


def bottleneck_forward(x_nchw, params, stride):
    """Pallas implementation of Bottleneck.forward (BN in inference mode)."""
    # NCHW<->NHWC transposes are kept only at the PyTorch interface boundary;
    # everything in between runs channels-last (lane-dense) in bf16.
    x = jnp.transpose(x_nchw, (0, 2, 3, 1))
    N, H, W, Cin = x.shape
    planes = params["w1"].shape[1]
    Cexp = params["w3"].shape[1]

    Cin_p = _round_up(Cin, 128)
    planes_p = _round_up(planes, 128)
    Cexp_p = _round_up(Cexp, 128)

    # Fold eval-mode BN into weights; zero-pad channel dims to multiples of 128.
    w1, b1 = _fold_bn_into_weight(params["w1"], params["bn1"])
    w2, b2 = _fold_bn_into_weight(params["w2"], params["bn2"])
    w3, b3 = _fold_bn_into_weight(params["w3"], params["bn3"])
    w1p = _pad_channels(jnp.pad(w1, ((0, Cin_p - Cin), (0, 0))), planes_p)
    w2p = _pad_channels(
        jnp.pad(w2, ((0, 0), (0, 0), (0, planes_p - planes), (0, 0))), planes_p)
    w3p = _pad_channels(jnp.pad(w3, ((0, planes_p - planes), (0, 0))), Cexp_p)
    b1p = _pad_channels(b1, planes_p)
    b2p = _pad_channels(b2, planes_p)
    b3p = _pad_channels(b3, Cexp_p)

    # Channel-padded bf16 NHWC input (padded channels are zero => no effect).
    xpad = _pad_channels(x, Cin_p).astype(jnp.bfloat16)

    # conv1 (1x1) + bn1 + relu
    out1 = fused_matmul_bias(xpad.reshape(N * H * W, Cin_p), w1p, b1p, relu=True)
    out1 = out1.reshape(N, H, W, planes_p)

    # conv2 (3x3, stride, pad=1) + bn2 + relu -- bf16 im2col + Pallas matmul
    patches, Ho, Wo = _im2col_3x3(out1, stride)
    out2 = fused_matmul_bias(patches, w2p.reshape(9 * planes_p, planes_p), b2p,
                             relu=True)

    # shortcut
    if stride != 1 or Cin != Cexp:
        ws, bs = _fold_bn_into_weight(params["ws"], params["bns"])
        wsp = _pad_channels(jnp.pad(ws, ((0, Cin_p - Cin), (0, 0))), Cexp_p)
        bsp = _pad_channels(bs, Cexp_p)
        xs = xpad[:, ::stride, ::stride, :].reshape(N * Ho * Wo, Cin_p)
        short = fused_matmul_bias(xs, wsp, bsp, relu=False)
    else:
        short = xpad.reshape(N * Ho * Wo, Cin_p)  # Cin_p == Cexp_p here

    # conv3 (1x1) + bn3 + residual add + relu, all fused; final output in f32
    out3 = fused_matmul_bias(out2, w3p, b3p, residual=short, relu=True,
                             out_dtype=jnp.float32)
    out = out3.reshape(N, Ho, Wo, Cexp_p)[..., :Cexp]
    return jnp.transpose(out, (0, 3, 1, 2))  # back to NCHW


# ------------------------ pure-JAX reference (check) ------------------------

def reference_forward(x_nchw, params, stride):
    x = jnp.transpose(x_nchw, (0, 2, 3, 1)).astype(jnp.float32)

    def conv(v, w_hwio, s, pad):
        return jax.lax.conv_general_dilated(
            v, w_hwio, (s, s), pad, dimension_numbers=("NHWC", "HWIO", "NHWC"))

    def bn(v, p):
        sc, bi = _bn_fold(*p)
        return v * sc + bi

    planes = params["w1"].shape[1]
    Cexp = params["w3"].shape[1]
    o = jax.nn.relu(bn(conv(x, params["w1"].reshape(1, 1, -1, planes), 1, "VALID"),
                       params["bn1"]))
    o = jax.nn.relu(bn(conv(o, params["w2"], stride, [(1, 1), (1, 1)]),
                       params["bn2"]))
    o = bn(conv(o, params["w3"].reshape(1, 1, planes, Cexp), 1, "VALID"),
           params["bn3"])
    if stride != 1 or x.shape[-1] != Cexp:
        sh = bn(conv(x, params["ws"].reshape(1, 1, x.shape[-1], Cexp), stride,
                     "VALID"), params["bns"])
    else:
        sh = x
    return jnp.transpose(jax.nn.relu(o + sh), (0, 3, 1, 2))


# ----------------------------------- main -----------------------------------

def init_params(key, in_planes, planes, stride):
    expansion = 4
    ks = jax.random.split(key, 16)

    def bn_params(k, c):
        k1, k2, k3, k4 = jax.random.split(k, 4)
        gamma = jax.random.uniform(k1, (c,), jnp.float32, 0.5, 1.5)
        beta = 0.1 * jax.random.normal(k2, (c,), jnp.float32)
        mean = 0.1 * jax.random.normal(k3, (c,), jnp.float32)
        var = jax.random.uniform(k4, (c,), jnp.float32, 0.5, 1.5)
        return (gamma, beta, mean, var)

    p = {
        # conv weights stored channels-last: 1x1 -> [Cin, Cout], 3x3 -> [3,3,Cin,Cout]
        "w1": 0.1 * jax.random.normal(ks[0], (in_planes, planes), jnp.float32),
        "w2": 0.1 * jax.random.normal(ks[1], (3, 3, planes, planes), jnp.float32),
        "w3": 0.1 * jax.random.normal(ks[2], (planes, expansion * planes), jnp.float32),
        "bn1": bn_params(ks[3], planes),
        "bn2": bn_params(ks[4], planes),
        "bn3": bn_params(ks[5], expansion * planes),
    }
    if stride != 1 or in_planes != expansion * planes:
        p["ws"] = 0.1 * jax.random.normal(ks[6], (in_planes, expansion * planes),
                                          jnp.float32)
        p["bns"] = bn_params(ks[7], expansion * planes)
    return p


if __name__ == "__main__":
    key = jax.random.PRNGKey(0)
    in_planes, planes, stride = 16, 8, 2
    N, H, W = 2, 16, 16

    kx, kp = jax.random.split(key)
    x = jax.random.normal(kx, (N, in_planes, H, W), jnp.float32)  # NCHW input
    params = init_params(kp, in_planes, planes, stride)

    fwd = jax.jit(functools.partial(bottleneck_forward, stride=stride))
    out = jax.block_until_ready(fwd(x, params))
    ref = jax.block_until_ready(reference_forward(x, params, stride))

    assert out.shape == (N, 4 * planes, H // stride, W // stride), out.shape
    # bf16 matmul operands / intermediates vs f32 XLA reference -> loose tol.
    np.testing.assert_allclose(np.asarray(out), np.asarray(ref),
                               rtol=5e-2, atol=5e-2)
    print("KERNEL_OK")
</pallas_src>

<mosaic_0001>
module attributes {stable_mosaic.version = 11 : i64} {
  func.func @_mm_bias_kernel(%arg0: i32, %arg1: memref<256x128xbf16, #tpu.memory_space<vmem>>, %arg2: memref<128x128xbf16, #tpu.memory_space<vmem>>, %arg3: memref<1x128xf32, #tpu.memory_space<vmem>>, %arg4: memref<256x128xbf16, #tpu.memory_space<vmem>>) attributes {dimension_semantics = [#tpu.dimension_semantics<parallel>], iteration_bounds = array<i64: 2>, scalar_prefetch = 0 : i64, scratch_operands = 0 : i64, tpu.core_type = #tpu.core_type<tc>, window_params = [{transform_indices = @transform_0, window_bounds = array<i64: 256, 128>}, {pipeline_mode = #tpu.pipeline_mode<synchronous>, transform_indices = @transform_1, window_bounds = array<i64: 128, 128>}, {pipeline_mode = #tpu.pipeline_mode<synchronous>, transform_indices = @transform_2, window_bounds = array<i64: 1, 128>}, {transform_indices = @transform_3, window_bounds = array<i64: 256, 128>}]} {
    %c0 = arith.constant 0 : index
    %c0_0 = arith.constant 0 : index
    %0 = vector.load %arg1[%c0, %c0_0] : memref<256x128xbf16, #tpu.memory_space<vmem>>, vector<256x128xbf16>
    %c0_1 = arith.constant 0 : index
    %c0_2 = arith.constant 0 : index
    %1 = vector.load %arg2[%c0_1, %c0_2] : memref<128x128xbf16, #tpu.memory_space<vmem>>, vector<128x128xbf16>
    %cst = arith.constant dense<0.000000e+00> : vector<256x128xf32>
    %2 = tpu.matmul %0, %1, %cst {dimension_numbers = #tpu.dot_dimension_numbers<[1], [0], [0], [1], [0, 0, 1, 1], [], []>} : vector<256x128xbf16>, vector<128x128xbf16>, vector<256x128xf32> -> vector<256x128xf32>
    %c0_3 = arith.constant 0 : index
    %c0_4 = arith.constant 0 : index
    %3 = vector.load %arg3[%c0_3, %c0_4] : memref<1x128xf32, #tpu.memory_space<vmem>>, vector<1x128xf32>
    %4 = vector.broadcast %3 : vector<1x128xf32> to vector<256x128xf32>
    %5 = arith.addf %2, %4 : vector<256x128xf32>
    %cst_5 = arith.constant 0.000000e+00 : f32
    %6 = vector.broadcast %cst_5 : f32 to vector<256x128xf32>
    %7 = arith.maximumf %5, %6 : vector<256x128xf32>
    %8 = arith.truncf %7 : vector<256x128xf32> to vector<256x128xbf16>
    %c0_6 = arith.constant 0 : index
    %c0_7 = arith.constant 0 : index
    %9 = vector.load %arg4[%c0_6, %c0_7] : memref<256x128xbf16, #tpu.memory_space<vmem>>, vector<256x128xbf16>
    tpu.vector_store %arg4[%c0_6, %c0_7], %8 {strides = array<i32>} : memref<256x128xbf16, #tpu.memory_space<vmem>>, vector<256x128xbf16>,
    return
  }
  func.func @transform_0(%arg0: i32) -> (i32, i32) {
    %c0_i32 = arith.constant 0 : i32
    %c0_i32_0 = arith.constant 0 : i32
    return %arg0, %c0_i32 : i32, i32
  }
  func.func @transform_1(%arg0: i32) -> (i32, i32) {
    %c0_i32 = arith.constant 0 : i32
    %c0_i32_0 = arith.constant 0 : i32
    %c0_i32_1 = arith.constant 0 : i32
    return %c0_i32, %c0_i32_0 : i32, i32
  }
  func.func @transform_2(%arg0: i32) -> (i32, i32) {
    %c0_i32 = arith.constant 0 : i32
    %c0_i32_0 = arith.constant 0 : i32
    %c0_i32_1 = arith.constant 0 : i32
    return %c0_i32, %c0_i32_0 : i32, i32
  }
  func.func @transform_3(%arg0: i32) -> (i32, i32) {
    %c0_i32 = arith.constant 0 : i32
    %c0_i32_0 = arith.constant 0 : i32
    return %arg0, %c0_i32 : i32, i32
  }
}

module attributes {stable_mosaic.version = 11 : i64} {
  func.func @_mm_bias_kernel(%arg0: i32, %arg1: memref<64x1152xbf16, #tpu.memory_space<vmem>>, %arg2: memref<1152x128xbf16, #tpu.memory_space<vmem>>, %arg3: memref<1x128xf32, #tpu.memory_space<vmem>>, %arg4: memref<64x128xbf16, #tpu.memory_space<vmem>>) attributes {dimension_semantics = [#tpu.dimension_semantics<parallel>], iteration_bounds = array<i64: 2>, scalar_prefetch = 0 : i64, scratch_operands = 0 : i64, tpu.core_type = #tpu.core_type<tc>, window_params = [{transform_indices = @transform_0, window_bounds = array<i64: 64, 1152>}, {pipeline_mode = #tpu.pipeline_mode<synchronous>, transform_indices = @transform_1, window_bounds = array<i64: 1152, 128>}, {pipeline_mode = #tpu.pipeline_mode<synchronous>, transform_indices = @transform_2, window_bounds = array<i64: 1, 128>}, {transform_indices = @transform_3, window_bounds = array<i64: 64, 128>}]} {
    %c0 = arith.constant 0 : index
    %c0_0 = arith.constant 0 : index
    %0 = vector.load %arg1[%c0, %c0_0] : memref<64x1152xbf16, #tpu.memory_space<vmem>>, vector<64x1152xbf16>
    %c0_1 = arith.constant 0 : index
    %c0_2 = arith.constant 0 : index
    %1 = vector.load %arg2[%c0_1, %c0_2] : memref<1152x128xbf16, #tpu.memory_space<vmem>>, vector<1152x128xbf16>
    %cst = arith.constant dense<0.000000e+00> : vector<64x128xf32>
    %2 = tpu.matmul %0, %1, %cst {dimension_numbers = #tpu.dot_dimension_numbers<[1], [0], [0], [1], [0, 0, 1, 1], [], []>} : vector<64x1152xbf16>, vector<1152x128xbf16>, vector<64x128xf32> -> vector<64x128xf32>
    %c0_3 = arith.constant 0 : index
    %c0_4 = arith.constant 0 : index
    %3 = vector.load %arg3[%c0_3, %c0_4] : memref<1x128xf32, #tpu.memory_space<vmem>>, vector<1x128xf32>
    %4 = vector.broadcast %3 : vector<1x128xf32> to vector<64x128xf32>
    %5 = arith.addf %2, %4 : vector<64x128xf32>
    %cst_5 = arith.constant 0.000000e+00 : f32
    %6 = vector.broadcast %cst_5 : f32 to vector<64x128xf32>
    %7 = arith.maximumf %5, %6 : vector<64x128xf32>
    %8 = arith.truncf %7 : vector<64x128xf32> to vector<64x128xbf16>
    %c0_6 = arith.constant 0 : index
    %c0_7 = arith.constant 0 : index
    %9 = vector.load %arg4[%c0_6, %c0_7] : memref<64x128xbf16, #tpu.memory_space<vmem>>, vector<64x128xbf16>
    tpu.vector_store %arg4[%c0_6, %c0_7], %8 {strides = array<i32>} : memref<64x128xbf16, #tpu.memory_space<vmem>>, vector<64x128xbf16>,
    return
  }
  func.func @transform_0(%arg0: i32) -> (i32, i32) {
    %c0_i32 = arith.constant 0 : i32
    %c0_i32_0 = arith.constant 0 : i32
    return %arg0, %c0_i32 : i32, i32
  }
  func.func @transform_1(%arg0: i32) -> (i32, i32) {
    %c0_i32 = arith.constant 0 : i32
    %c0_i32_0 = arith.constant 0 : i32
    %c0_i32_1 = arith.constant 0 : i32
    return %c0_i32, %c0_i32_0 : i32, i32
  }
  func.func @transform_2(%arg0: i32) -> (i32, i32) {
    %c0_i32 = arith.constant 0 : i32
    %c0_i32_0 = arith.constant 0 : i32
    %c0_i32_1 = arith.constant 0 : i32
    return %c0_i32, %c0_i32_0 : i32, i32
  }
  func.func @transform_3(%arg0: i32) -> (i32, i32) {
    %c0_i32 = arith.constant 0 : i32
    %c0_i32_0 = arith.constant 0 : i32
    return %arg0, %c0_i32 : i32, i32
  }
}

module attributes {stable_mosaic.version = 11 : i64} {
  func.func @_mm_bias_kernel(%arg0: i32, %arg1: memref<64x128xbf16, #tpu.memory_space<vmem>>, %arg2: memref<128x128xbf16, #tpu.memory_space<vmem>>, %arg3: memref<1x128xf32, #tpu.memory_space<vmem>>, %arg4: memref<64x128xbf16, #tpu.memory_space<vmem>>) attributes {dimension_semantics = [#tpu.dimension_semantics<parallel>], iteration_bounds = array<i64: 2>, scalar_prefetch = 0 : i64, scratch_operands = 0 : i64, tpu.core_type = #tpu.core_type<tc>, window_params = [{transform_indices = @transform_0, window_bounds = array<i64: 64, 128>}, {pipeline_mode = #tpu.pipeline_mode<synchronous>, transform_indices = @transform_1, window_bounds = array<i64: 128, 128>}, {pipeline_mode = #tpu.pipeline_mode<synchronous>, transform_indices = @transform_2, window_bounds = array<i64: 1, 128>}, {transform_indices = @transform_3, window_bounds = array<i64: 64, 128>}]} {
    %c0 = arith.constant 0 : index
    %c0_0 = arith.constant 0 : index
    %0 = vector.load %arg1[%c0, %c0_0] : memref<64x128xbf16, #tpu.memory_space<vmem>>, vector<64x128xbf16>
    %c0_1 = arith.constant 0 : index
    %c0_2 = arith.constant 0 : index
    %1 = vector.load %arg2[%c0_1, %c0_2] : memref<128x128xbf16, #tpu.memory_space<vmem>>, vector<128x128xbf16>
    %cst = arith.constant dense<0.000000e+00> : vector<64x128xf32>
    %2 = tpu.matmul %0, %1, %cst {dimension_numbers = #tpu.dot_dimension_numbers<[1], [0], [0], [1], [0, 0, 1, 1], [], []>} : vector<64x128xbf16>, vector<128x128xbf16>, vector<64x128xf32> -> vector<64x128xf32>
    %c0_3 = arith.constant 0 : index
    %c0_4 = arith.constant 0 : index
    %3 = vector.load %arg3[%c0_3, %c0_4] : memref<1x128xf32, #tpu.memory_space<vmem>>, vector<1x128xf32>
    %4 = vector.broadcast %3 : vector<1x128xf32> to vector<64x128xf32>
    %5 = arith.addf %2, %4 : vector<64x128xf32>
    %6 = arith.truncf %5 : vector<64x128xf32> to vector<64x128xbf16>
    %c0_5 = arith.constant 0 : index
    %c0_6 = arith.constant 0 : index
    %7 = vector.load %arg4[%c0_5, %c0_6] : memref<64x128xbf16, #tpu.memory_space<vmem>>, vector<64x128xbf16>
    tpu.vector_store %arg4[%c0_5, %c0_6], %6 {strides = array<i32>} : memref<64x128xbf16, #tpu.memory_space<vmem>>, vector<64x128xbf16>,
    return
  }
  func.func @transform_0(%arg0: i32) -> (i32, i32) {
    %c0_i32 = arith.constant 0 : i32
    %c0_i32_0 = arith.constant 0 : i32
    return %arg0, %c0_i32 : i32, i32
  }
  func.func @transform_1(%arg0: i32) -> (i32, i32) {
    %c0_i32 = arith.constant 0 : i32
    %c0_i32_0 = arith.constant 0 : i32
    %c0_i32_1 = arith.constant 0 : i32
    return %c0_i32, %c0_i32_0 : i32, i32
  }
  func.func @transform_2(%arg0: i32) -> (i32, i32) {
    %c0_i32 = arith.constant 0 : i32
    %c0_i32_0 = arith.constant 0 : i32
    %c0_i32_1 = arith.constant 0 : i32
    return %c0_i32, %c0_i32_0 : i32, i32
  }
  func.func @transform_3(%arg0: i32) -> (i32, i32) {
    %c0_i32 = arith.constant 0 : i32
    %c0_i32_0 = arith.constant 0 : i32
    return %arg0, %c0_i32 : i32, i32
  }
}

module attributes {stable_mosaic.version = 11 : i64} {
  func.func @_mm_bias_res_relu_kernel(%arg0: i32, %arg1: memref<64x128xbf16, #tpu.memory_space<vmem>>, %arg2: memref<128x128xbf16, #tpu.memory_space<vmem>>, %arg3: memref<1x128xf32, #tpu.memory_space<vmem>>, %arg4: memref<64x128xbf16, #tpu.memory_space<vmem>>, %arg5: memref<64x128xf32, #tpu.memory_space<vmem>>) attributes {dimension_semantics = [#tpu.dimension_semantics<parallel>], iteration_bounds = array<i64: 2>, scalar_prefetch = 0 : i64, scratch_operands = 0 : i64, tpu.core_type = #tpu.core_type<tc>, window_params = [{transform_indices = @transform_0, window_bounds = array<i64: 64, 128>}, {pipeline_mode = #tpu.pipeline_mode<synchronous>, transform_indices = @transform_1, window_bounds = array<i64: 128, 128>}, {pipeline_mode = #tpu.pipeline_mode<synchronous>, transform_indices = @transform_2, window_bounds = array<i64: 1, 128>}, {transform_indices = @transform_3, window_bounds = array<i64: 64, 128>}, {transform_indices = @transform_4, window_bounds = array<i64: 64, 128>}]} {
    %c0 = arith.constant 0 : index
    %c0_0 = arith.constant 0 : index
    %0 = vector.load %arg1[%c0, %c0_0] : memref<64x128xbf16, #tpu.memory_space<vmem>>, vector<64x128xbf16>
    %c0_1 = arith.constant 0 : index
    %c0_2 = arith.constant 0 : index
    %1 = vector.load %arg2[%c0_1, %c0_2] : memref<128x128xbf16, #tpu.memory_space<vmem>>, vector<128x128xbf16>
    %cst = arith.constant dense<0.000000e+00> : vector<64x128xf32>
    %2 = tpu.matmul %0, %1, %cst {dimension_numbers = #tpu.dot_dimension_numbers<[1], [0], [0], [1], [0, 0, 1, 1], [], []>} : vector<64x128xbf16>, vector<128x128xbf16>, vector<64x128xf32> -> vector<64x128xf32>
    %c0_3 = arith.constant 0 : index
    %c0_4 = arith.constant 0 : index
    %3 = vector.load %arg3[%c0_3, %c0_4] : memref<1x128xf32, #tpu.memory_space<vmem>>, vector<1x128xf32>
    %4 = vector.broadcast %3 : vector<1x128xf32> to vector<64x128xf32>
    %5 = arith.addf %2, %4 : vector<64x128xf32>
    %c0_5 = arith.constant 0 : index
    %c0_6 = arith.constant 0 : index
    %6 = vector.load %arg4[%c0_5, %c0_6] : memref<64x128xbf16, #tpu.memory_space<vmem>>, vector<64x128xbf16>
    %7 = arith.extf %6 : vector<64x128xbf16> to vector<64x128xf32>
    %8 = arith.addf %5, %7 : vector<64x128xf32>
    %cst_7 = arith.constant 0.000000e+00 : f32
    %9 = vector.broadcast %cst_7 : f32 to vector<64x128xf32>
    %10 = arith.maximumf %8, %9 : vector<64x128xf32>
    %c0_8 = arith.constant 0 : index
    %c0_9 = arith.constant 0 : index
    %11 = vector.load %arg5[%c0_8, %c0_9] : memref<64x128xf32, #tpu.memory_space<vmem>>, vector<64x128xf32>
    tpu.vector_store %arg5[%c0_8, %c0_9], %10 {strides = array<i32>} : memref<64x128xf32, #tpu.memory_space<vmem>>, vector<64x128xf32>,
    return
  }
  func.func @transform_0(%arg0: i32) -> (i32, i32) {
    %c0_i32 = arith.constant 0 : i32
    %c0_i32_0 = arith.constant 0 : i32
    return %arg0, %c0_i32 : i32, i32
  }
  func.func @transform_1(%arg0: i32) -> (i32, i32) {
    %c0_i32 = arith.constant 0 : i32
    %c0_i32_0 = arith.constant 0 : i32
    %c0_i32_1 = arith.constant 0 : i32
    return %c0_i32, %c0_i32_0 : i32, i32
  }
  func.func @transform_2(%arg0: i32) -> (i32, i32) {
    %c0_i32 = arith.constant 0 : i32
    %c0_i32_0 = arith.constant 0 : i32
    %c0_i32_1 = arith.constant 0 : i32
    return %c0_i32, %c0_i32_0 : i32, i32
  }
  func.func @transform_3(%arg0: i32) -> (i32, i32) {
    %c0_i32 = arith.constant 0 : i32
    %c0_i32_0 = arith.constant 0 : i32
    return %arg0, %c0_i32 : i32, i32
  }
  func.func @transform_4(%arg0: i32) -> (i32, i32) {
    %c0_i32 = arith.constant 0 : i32
    %c0_i32_0 = arith.constant 0 : i32
    return %arg0, %c0_i32 : i32, i32
  }
}

</mosaic_0001>

<bundles_post_ra>
// kernel: bottleneck_forward.4
= control target key start
LH: loop header
LB: loop body
LE: loop exit
PB: predicated region body
PF: predicated region fallthrough
CT: control target
= control target key end

     0   :  { %s1126_s12 = smov 0   ;;  %s1247_s0 = inlined_call_operand.vmem [shape: bf16[512,128], index: 0, kind: input, shape index: {}]   ;;  %s1248_s1 = inlined_call_operand.vmem [shape: bf16[128,128], index: 1, kind: input, shape index: {}]   ;;  %s1249_s2 = inlined_call_operand.vmem [shape: f32[1,128], index: 2, kind: input, shape index: {}]   ;;  %s1250_s3 = inlined_call_operand.vmem [shape: bf16[512,128], index: 3, kind: output, shape index: {}]  }
   0x1 LB: > { %s783_s13 = sadd.s32 4294967295, %s1104_s12   ;;  %p787_p0 = scmp.ge.s32.totalorder %s1104_s12, 1  ;;  %s1104_s12 = sphi %s1126_s12, %s13_s12  }
   0x2   : > { %p138_p1 = scmp.lt.s32.totalorder %s1104_s12, 3 }
   0x4   : > { %p139_p2 = pnand %p787_p0, %p138_p1 }
   0x5   : > { %s788_s16 = sshll.u32 (!%p139_p2), %s783_s13, 5 }
   0x6   : > { %142 = sbr.rel (%p139_p2) target bundleno = 274 (0x112), region = 32  ;;  %p163_p3 = scmp.lt.s32.totalorder (!%p139_p2), %s788_s16, 63 }
   0xb   : > { %v1074_v0 = vld [vmem:[%s1248_s1 + $0x38] sm:$0xff]   ;;  %v1075_v1 = vld [vmem:[%s1248_s1 + $0x30] sm:$0xff]   ;;  %s1252_s16 = smov (!%p163_p3, %s788_s16), 63  ;;  %v1076_v2 = vld [vmem:[%s1248_s1 + $0x28] sm:$0xff]  }
   0xc   : > { %1002 = vmatprep.subr.bf16.mxu0 %v1074_v0  ;;  %1050 = vmatprep.subr.bf16.mxu1 %v1074_v0  ;;  %s789_s21 = sshll.u32 %s1252_s16, 2  ;;  %v1077_v3 = vld [vmem:[%s1248_s1 + $0x20] sm:$0xff]   ;;  %v1078_v6 = vld [vmem:[%s1248_s1 + $0x18] sm:$0xff]   ;;  %v1079_v7 = vld [vmem:[%s1248_s1 + $0x10] sm:$0xff]  }
   0xd   : > { %1003 = vmatpush3.bf16.msra.mxu0 %v1074_v0  ;;  %1058 = vmatpush3.bf16.msra.mxu1 %v1074_v0  ;;  %s1151_s24 = scalar_lea.vmem %s1247_s0, %s789_s21  ;;  %v1080_v8 = vld [vmem:[%s1248_s1 + $0x8] sm:$0xff]   ;;  %v1081_v9 = vld [vmem:[%s1248_s1] sm:$0xff]   ;;  %s1202_s13 = scalar_lea.vmem %s1250_s3, %s789_s21 }
   0xe   : > { %1004 = vmatprep.subr.bf16.mxu0 %v1075_v1  ;;  %1051 = vmatprep.subr.bf16.mxu1 %v1075_v1  ;;  %v1082_v4 = vld [vmem:[%s1151_s24] sm:$0xff]   ;;  %v1084_v10 = vld [vmem:[%s1151_s24 + $0x8] sm:$0xff]   ;;  %v1086_v12 = vld [vmem:[%s1151_s24 + $0x10] sm:$0xff]  }
   0xf   : > { %v1083_v5 = vld [vmem:[%s1151_s24 + $0x40] sm:$0xff]   ;;  %1018 = vmatprep.mubr.bf16.mxu0 %v1082_v4  ;;  %v1085_v11 = vld [vmem:[%s1151_s24 + $0x48] sm:$0xff]   ;;  %v1087_v13 = vld [vmem:[%s1151_s24 + $0x50] sm:$0xff]  }
  0x10   : > { %1034 = vmatprep.mubr.bf16.mxu1 %v1083_v5  ;;  %v1088_v14 = vld [vmem:[%s1151_s24 + $0x18] sm:$0xff]   ;;  %v1090_v16 = vld [vmem:[%s1151_s24 + $0x20] sm:$0xff]   ;;  %v1092_v18 = vld [vmem:[%s1151_s24 + $0x28] sm:$0xff]  }
  0x11   : > { %1005 = vmatpush3.bf16.msra.mxu0 %v1075_v1  ;;  %1059 = vmatpush3.bf16.msra.mxu1 %v1075_v1  ;;  %v1089_v15 = vld [vmem:[%s1151_s24 + $0x58] sm:$0xff]   ;;  %v1091_v17 = vld [vmem:[%s1151_s24 + $0x60] sm:$0xff]   ;;  %v1093_v19 = vld [vmem:[%s1151_s24 + $0x68] sm:$0xff]  }
  0x12   : > { %1006 = vmatprep.subr.bf16.mxu0 %v1076_v2  ;;  %1052 = vmatprep.subr.bf16.mxu1 %v1076_v2  ;;  %v1094_v20 = vld [vmem:[%s1151_s24 + $0x30] sm:$0xff]   ;;  %v1096_v22 = vld [vmem:[%s1151_s24 + $0x38] sm:$0xff]   ;;  %v1187_v24 = vld [vmem:[%s1249_s2] ss:$0 sm:$0xff] }
  0x13   : > { %v1095_v21 = vld [vmem:[%s1151_s24 + $0x70] sm:$0xff]   ;;  %v1097_v23 = vld [vmem:[%s1151_s24 + $0x78] sm:$0xff]  }
  0x15   : > { %1007 = vmatpush3.bf16.msra.mxu0 %v1076_v2  ;;  %1060 = vmatpush3.bf16.msra.mxu1 %v1076_v2 }
  0x16   : > { %1008 = vmatprep.subr.bf16.mxu0 %v1077_v3  ;;  %1053 = vmatprep.subr.bf16.mxu1 %v1077_v3 }
  0x19   : > { %1009 = vmatpush3.bf16.msra.mxu0 %v1077_v3  ;;  %1061 = vmatpush3.bf16.msra.mxu1 %v1077_v3 }
  0x1a   : > { %1010 = vmatprep.subr.bf16.mxu0 %v1078_v6  ;;  %1054 = vmatprep.subr.bf16.mxu1 %v1078_v6 }
  0x1d   : > { %1011 = vmatpush3.bf16.msra.mxu0 %v1078_v6  ;;  %1062 = vmatpush3.bf16.msra.mxu1 %v1078_v6 }
  0x1e   : > { %1012 = vmatprep.subr.bf16.mxu0 %v1079_v7  ;;  %1055 = vmatprep.subr.bf16.mxu1 %v1079_v7 }
  0x21   : > { %1013 = vmatpush3.bf16.msra.mxu0 %v1079_v7  ;;  %1063 = vmatpush3.bf16.msra.mxu1 %v1079_v7 }
  0x22   : > { %1014 = vmatprep.subr.bf16.mxu0 %v1080_v8  ;;  %1056 = vmatprep.subr.bf16.mxu1 %v1080_v8 }
  0x25   : > { %1015 = vmatpush3.bf16.msra.mxu0 %v1080_v8  ;;  %1064 = vmatpush3.bf16.msra.mxu1 %v1080_v8 }
  0x26   : > { %1016 = vmatprep.subr.bf16.mxu0 %v1081_v9  ;;  %1057 = vmatprep.subr.bf16.mxu1 %v1081_v9 }
  0x29   : > { %1017 = vmatpush3.bf16.msra.mxu0 %v1081_v9  ;;  %1065 = vmatpush3.bf16.msra.mxu1 %v1081_v9 }
  0x2c   : > { %1019 = vmatmul.mubr.bf16.vlgmr.msra.gmra.mxu0 %v1084_v10  ;;  %1035 = vmatmul.mubr.bf16.vlgmr.msra.gmra.mxu1 %v1085_v11 }
  0x2d   : > { %1022 = vmatprep.mubr.bf16.mxu0 %v1086_v12  ;;  %1038 = vmatprep.mubr.bf16.mxu1 %v1087_v13 }
  0x34   : > { %1023 = vmatmul.mubr.bf16.gmra.mxu0 %v1088_v14  ;;  %1039 = vmatmul.mubr.bf16.gmra.mxu1 %v1089_v15 }
  0x35   : > { %1026 = vmatprep.mubr.bf16.mxu0 %v1090_v16  ;;  %1042 = vmatprep.mubr.bf16.mxu1 %v1091_v17 }
  0x3c   : > { %1027 = vmatmul.mubr.bf16.gmra.mxu0 %v1092_v18  ;;  %1043 = vmatmul.mubr.bf16.gmra.mxu1 %v1093_v19 }
  0x3d   : > { %1030 = vmatprep.mubr.bf16.mxu0 %v1094_v20  ;;  %1046 = vmatprep.mubr.bf16.mxu1 %v1095_v21 }
  0x44   : > { %1031 = vmatmul.mubr.bf16.gmra.mxu0 %v1096_v22  ;;  %1047 = vmatmul.mubr.bf16.gmra.mxu1 %v1097_v23 }
  0xec   : > { %v1020_v25 = vpop.f32.mrf.mxu0  ;;  %v1036_v26 = vpop.f32.mrf.mxu1 }
  0xed   : > { %v417_v27 = vadd.f32 %v1020_v25, %v1187_v24  ;;  %v481_v28 = vadd.f32 %v1036_v26, %v1187_v24 }
  0xee   : > { %v408_v29 = vpop.f32.mrf.mxu0  ;;  %v472_v30 = vpop.f32.mrf.mxu1 }
  0xef   : > { %v409_v31 = vadd.f32 %v1187_v24, %v408_v29  ;;  %v473_v32 = vadd.f32 %v1187_v24, %v472_v30  ;;  %v537_v37 = vmax.f32 %v417_v27, 0.0  ;;  %v553_v38 = vmax.f32 %v481_v28, 0.0 }
  0xf0   : > { %v1021_v33 = vpop.f32.mrf.mxu0  ;;  %v1037_v34 = vpop.f32.mrf.mxu1 }
  0xf1   : > { %v420_v35 = vadd.f32 %v1021_v33, %v1187_v24  ;;  %v484_v36 = vadd.f32 %v1037_v34, %v1187_v24  ;;  %v535_v45 = vmax.f32 %v409_v31, 0.0  ;;  %v551_v46 = vmax.f32 %v473_v32, 0.0 }
  0xf2   : > { %v411_v39 = vpop.f32.mrf.mxu0  ;;  %v475_v40 = vpop.f32.mrf.mxu1 }
  0xf3   : > { %v538_v41 = vmax.f32 %v420_v35, 0.0  ;;  %v554_v42 = vmax.f32 %v484_v36, 0.0  ;;  %v412_v43 = vadd.f32 %v1187_v24, %v411_v39  ;;  %v476_v44 = vadd.f32 %v1187_v24, %v475_v40 }
  0xf4   : > { %v1024_v47 = vpop.f32.mrf.mxu0  ;;  %v1040_v48 = vpop.f32.mrf.mxu1 }
  0xf5   : > { %v891_v49 = vpack.c.bf16 %v538_v41, %v537_v37  ;;  %v931_v50 = vpack.c.bf16 %v554_v42, %v553_v38  ;;  %v536_v51 = vmax.f32 %v412_v43, 0.0  ;;  %v552_v52 = vmax.f32 %v476_v44, 0.0 }
  0xf6   : > { %v433_v53 = vadd.f32 %v1024_v47, %v1187_v24  ;;  %v497_v54 = vadd.f32 %v1040_v48, %v1187_v24  ;;  %v424_v55 = vpop.f32.mrf.mxu0  ;;  %v488_v56 = vpop.f32.mrf.mxu1 }
  0xf7   : > { %963 = vst [vmem:[%s1202_s13 + $0x8] sm:$0xff] %v891_v49   ;;  %971 = vst [vmem:[%s1202_s13 + $0x48] sm:$0xff] %v931_v50   ;;  %v886_v57 = vpack.c.bf16 %v536_v51, %v535_v45  ;;  %v926_v58 = vpack.c.bf16 %v552_v52, %v551_v46  ;;  %v425_v59 = vadd.f32 %v1187_v24, %v424_v55 }
  0xf8   : > { %v489_v60 = vadd.f32 %v1187_v24, %v488_v56  ;;  %v1025_v61 = vpop.f32.mrf.mxu0  ;;  %v1041_v62 = vpop.f32.mrf.mxu1  ;;  %v541_v1 = vmax.f32 %v433_v53, 0.0  ;;  %v557_v2 = vmax.f32 %v497_v54, 0.0 }
  0xf9   : > { %887 = vst [vmem:[%s1202_s13] sm:$0xff] %v886_v57   ;;  %970 = vst [vmem:[%s1202_s13 + $0x40] sm:$0xff] %v926_v58   ;;  %v436_v63 = vadd.f32 %v1025_v61, %v1187_v24  ;;  %v500_v0 = vadd.f32 %v1041_v62, %v1187_v24  ;;  %v539_v9 = vmax.f32 %v425_v59, 0.0 }
  0xfa   : > { %v427_v3 = vpop.f32.mrf.mxu0  ;;  %v491_v4 = vpop.f32.mrf.mxu1  ;;  %v555_v10 = vmax.f32 %v489_v60, 0.0 }
  0xfb   : > { %v542_v5 = vmax.f32 %v436_v63, 0.0  ;;  %v558_v6 = vmax.f32 %v500_v0, 0.0  ;;  %v428_v7 = vadd.f32 %v1187_v24, %v427_v3  ;;  %v492_v8 = vadd.f32 %v1187_v24, %v491_v4 }
  0xfc   : > { %v1028_v11 = vpop.f32.mrf.mxu0  ;;  %v1044_v12 = vpop.f32.mrf.mxu1 }
  0xfd   : > { %v901_v13 = vpack.c.bf16 %v542_v5, %v541_v1  ;;  %v941_v14 = vpack.c.bf16 %v558_v6, %v557_v2  ;;  %v540_v15 = vmax.f32 %v428_v7, 0.0  ;;  %v556_v16 = vmax.f32 %v492_v8, 0.0 }
  0xfe   : > { %v449_v17 = vadd.f32 %v1028_v11, %v1187_v24  ;;  %v513_v18 = vadd.f32 %v1044_v12, %v1187_v24  ;;  %v440_v19 = vpop.f32.mrf.mxu0  ;;  %v504_v20 = vpop.f32.mrf.mxu1 }
  0xff   : > { %965 = vst [vmem:[%s1202_s13 + $0x18] sm:$0xff] %v901_v13   ;;  %973 = vst [vmem:[%s1202_s13 + $0x58] sm:$0xff] %v941_v14   ;;  %v896_v21 = vpack.c.bf16 %v540_v15, %v539_v9  ;;  %v936_v22 = vpack.c.bf16 %v556_v16, %v555_v10  ;;  %v441_v23 = vadd.f32 %v1187_v24, %v440_v19 }
 0x100   : > { %v505_v25 = vadd.f32 %v1187_v24, %v504_v20  ;;  %v1029_v26 = vpop.f32.mrf.mxu0  ;;  %v1045_v27 = vpop.f32.mrf.mxu1  ;;  %v545_v30 = vmax.f32 %v449_v17, 0.0  ;;  %v561_v31 = vmax.f32 %v513_v18, 0.0 }
 0x101   : > { %964 = vst [vmem:[%s1202_s13 + $0x10] sm:$0xff] %v896_v21   ;;  %972 = vst [vmem:[%s1202_s13 + $0x50] sm:$0xff] %v936_v22   ;;  %v452_v28 = vadd.f32 %v1029_v26, %v1187_v24  ;;  %v516_v29 = vadd.f32 %v1045_v27, %v1187_v24  ;;  %v543_v38 = vmax.f32 %v441_v23, 0.0 }
 0x102   : > { %v443_v32 = vpop.f32.mrf.mxu0  ;;  %v507_v33 = vpop.f32.mrf.mxu1  ;;  %v559_v39 = vmax.f32 %v505_v25, 0.0 }
 0x103   : > { %v546_v34 = vmax.f32 %v452_v28, 0.0  ;;  %v562_v35 = vmax.f32 %v516_v29, 0.0  ;;  %v444_v36 = vadd.f32 %v1187_v24, %v443_v32  ;;  %v508_v37 = vadd.f32 %v1187_v24, %v507_v33 }
 0x104   : > { %v1032_v40 = vpop.f32.mrf.mxu0  ;;  %v1048_v41 = vpop.f32.mrf.mxu1 }
 0x105   : > { %v911_v42 = vpack.c.bf16 %v546_v34, %v545_v30  ;;  %v951_v43 = vpack.c.bf16 %v562_v35, %v561_v31  ;;  %v544_v44 = vmax.f32 %v444_v36, 0.0  ;;  %v560_v45 = vmax.f32 %v508_v37, 0.0 }
 0x106   : > { %v465_v46 = vadd.f32 %v1032_v40, %v1187_v24  ;;  %v529_v47 = vadd.f32 %v1048_v41, %v1187_v24  ;;  %v456_v48 = vpop.f32.mrf.mxu0  ;;  %v520_v49 = vpop.f32.mrf.mxu1 }
 0x107   : > { %967 = vst [vmem:[%s1202_s13 + $0x28] sm:$0xff] %v911_v42   ;;  %975 = vst [vmem:[%s1202_s13 + $0x68] sm:$0xff] %v951_v43   ;;  %v906_v50 = vpack.c.bf16 %v544_v44, %v543_v38  ;;  %v946_v51 = vpack.c.bf16 %v560_v45, %v559_v39  ;;  %v457_v52 = vadd.f32 %v1187_v24, %v456_v48 }
 0x108   : > { %v521_v53 = vadd.f32 %v1187_v24, %v520_v49  ;;  %v1033_v54 = vpop.f32.mrf.mxu0  ;;  %v1049_v55 = vpop.f32.mrf.mxu1  ;;  %v549_v58 = vmax.f32 %v465_v46, 0.0  ;;  %v565_v59 = vmax.f32 %v529_v47, 0.0 }
 0x109   : > { %966 = vst [vmem:[%s1202_s13 + $0x20] sm:$0xff] %v906_v50   ;;  %974 = vst [vmem:[%s1202_s13 + $0x60] sm:$0xff] %v946_v51   ;;  %v468_v56 = vadd.f32 %v1033_v54, %v1187_v24  ;;  %v532_v57 = vadd.f32 %v1049_v55, %v1187_v24  ;;  %v547_v2 = vmax.f32 %v457_v52, 0.0 }
 0x10a   : > { %v459_v60 = vpop.f32.mrf.mxu0  ;;  %v523_v61 = vpop.f32.mrf.mxu1  ;;  %v563_v3 = vmax.f32 %v521_v53, 0.0 }
 0x10b   : > { %v550_v62 = vmax.f32 %v468_v56, 0.0  ;;  %v566_v63 = vmax.f32 %v532_v57, 0.0  ;;  %v460_v0 = vadd.f32 %v1187_v24, %v459_v60  ;;  %v524_v1 = vadd.f32 %v1187_v24, %v523_v61 }
 0x10d   : > { %v921_v4 = vpack.c.bf16 %v550_v62, %v549_v58  ;;  %v961_v5 = vpack.c.bf16 %v566_v63, %v565_v59  ;;  %v548_v6 = vmax.f32 %v460_v0, 0.0  ;;  %v564_v7 = vmax.f32 %v524_v1, 0.0 }
 0x10f   : > { %969 = vst [vmem:[%s1202_s13 + $0x38] sm:$0xff] %v921_v4   ;;  %977 = vst [vmem:[%s1202_s13 + $0x78] sm:$0xff] %v961_v5   ;;  %v916_v8 = vpack.c.bf16 %v548_v6, %v547_v2  ;;  %v956_v9 = vpack.c.bf16 %v564_v7, %v563_v3 }
 0x111   : > { %968 = vst [vmem:[%s1202_s13 + $0x30] sm:$0xff] %v916_v8   ;;  %976 = vst [vmem:[%s1202_s13 + $0x70] sm:$0xff] %v956_v9  }
 0x112 PF: > { %s13_s12 = sadd.s32 1, %s1104_s12  }
 0x113   : > { %p10_p4 = scmp.ge.s32.totalorder %s13_s12, 4  }
 0x115   :  { %12 = sbr.rel (!%p10_p4) target bundleno = 1 (0x1), region = 62 }

// kernel: bottleneck_forward.5
= control target key start
LH: loop header
LB: loop body
LE: loop exit
PB: predicated region body
PF: predicated region fallthrough
CT: control target
= control target key end

     0   :  { %s1946_s12 = smov 0   ;;  %s2289_s0 = inlined_call_operand.vmem [shape: bf16[128,1152], index: 0, kind: input, shape index: {}]   ;;  %s2290_s1 = inlined_call_operand.vmem [shape: bf16[1152,128], index: 1, kind: input, shape index: {}]   ;;  %s2291_s2 = inlined_call_operand.vmem [shape: f32[1,128], index: 2, kind: input, shape index: {}]   ;;  %s2292_s3 = inlined_call_operand.vmem [shape: bf16[128,128], index: 3, kind: output, shape index: {}]  }
   0x1 LB: > { %s1414_s13 = sadd.s32 4294967295, %s1924_s12   ;;  %p1418_p0 = scmp.ge.s32.totalorder %s1924_s12, 1  ;;  %s1924_s12 = sphi %s1946_s12, %s13_s12  }
   0x2   : > { %p139_p1 = scmp.lt.s32.totalorder %s1924_s12, 3 }
   0x4   : > { %p140_p2 = pnand %p1418_p0, %p139_p1 }
   0x6   : > { %143 = sbr.rel (%p140_p2) target bundleno = 317 (0x13d), region = 32 }
   0xb   : > { %v1794_v0 = vld [vmem:[%s2290_s1 + $0x78] sm:$0xff]   ;;  %v1798_v4 = vld [vmem:[%s2290_s1 + $0x70] sm:$0xff]   ;;  %v1802_v8 = vld [vmem:[%s2290_s1 + $0x68] sm:$0xff]   ;;  %s1419_s19 = sshll.u32 %s1414_s13, 3 }
   0xc   : > { %v1795_v1 = vld [vmem:[%s2290_s1 + $0xf8] sm:$0xff]   ;;  %1573 = vmatprep.subr.bf16.mxu0 %v1794_v0  ;;  %v1799_v5 = vld [vmem:[%s2290_s1 + $0xf0] sm:$0xff]   ;;  %v1803_v9 = vld [vmem:[%s2290_s1 + $0xe8] sm:$0xff]   ;;  %p165_p3 = scmp.lt.s32.totalorder %s1419_s19, 15 }
   0xd   : > { %v1796_v2 = vld [vmem:[%s2290_s1 + $0x38] sm:$0xff]   ;;  %1613 = vmatprep.subr.bf16.mxu1 %v1795_v1  ;;  %v1800_v6 = vld [vmem:[%s2290_s1 + $0x30] sm:$0xff]   ;;  %v1804_v10 = vld [vmem:[%s2290_s1 + $0x28] sm:$0xff]  }
   0xe   : > { %v1797_v3 = vld [vmem:[%s2290_s1 + $0xb8] sm:$0xff]   ;;  %1574 = vmatpush3.bf16.msra.mxu0 %v1796_v2  ;;  %v1801_v7 = vld [vmem:[%s2290_s1 + $0xb0] sm:$0xff]   ;;  %v1805_v11 = vld [vmem:[%s2290_s1 + $0xa8] sm:$0xff]   ;;  %s2304_s19 = smov (!%p165_p3, %s1419_s19), 15 }
   0xf   : > { %1614 = vmatpush3.bf16.msra.mxu1 %v1797_v3  ;;  %1575 = vmatprep.subr.bf16.mxu0 %v1798_v4  ;;  %v1806_v12 = vld [vmem:[%s2290_s1 + $0x60] sm:$0xff]   ;;  %v1810_v16 = vld [vmem:[%s2290_s1 + $0x58] sm:$0xff]   ;;  %v1814_v20 = vld [vmem:[%s2290_s1 + $0x50] sm:$0xff]   ;;  %s1785_s16 = smul.u32 36, %s2304_s19 }
  0x10   : > { %1615 = vmatprep.subr.bf16.mxu1 %v1799_v5  ;;  %v1807_v13 = vld [vmem:[%s2290_s1 + $0xe0] sm:$0xff]   ;;  %v1811_v17 = vld [vmem:[%s2290_s1 + $0xd8] sm:$0xff]   ;;  %v1815_v21 = vld [vmem:[%s2290_s1 + $0xd0] sm:$0xff]  }
  0x11   : > { %v1808_v14 = vld [vmem:[%s2290_s1 + $0x20] sm:$0xff]   ;;  %v1812_v18 = vld [vmem:[%s2290_s1 + $0x18] sm:$0xff]   ;;  %v1816_v22 = vld [vmem:[%s2290_s1 + $0x10] sm:$0xff]   ;;  %s2052_s13 = scalar_lea.vmem %s2289_s0, %s1785_s16  ;;  %s1422_s16 = sshll.u32 %s2304_s19, 2 }
  0x12   : > { %1576 = vmatpush3.bf16.msra.mxu0 %v1800_v6  ;;  %v1809_v15 = vld [vmem:[%s2290_s1 + $0xa0] sm:$0xff]   ;;  %v1813_v19 = vld [vmem:[%s2290_s1 + $0x98] sm:$0xff]   ;;  %v1817_v23 = vld [vmem:[%s2290_s1 + $0x90] sm:$0xff]   ;;  %s175_s20 = scalar_lea.vmem %s2292_s3, %s1422_s16 }
  0x13   : > { %1616 = vmatpush3.bf16.msra.mxu1 %v1801_v7  ;;  %1577 = vmatprep.subr.bf16.mxu0 %v1802_v8  ;;  %v1818_v24 = vld [vmem:[%s2290_s1 + $0x48] sm:$0xff]   ;;  %v1822_v28 = vld [vmem:[%s2290_s1 + $0x40] sm:$0xff]   ;;  %v1832_v36 = vld [vmem:[%s2290_s1 + $0x178] sm:$0xff]  }
  0x14   : > { %1617 = vmatprep.subr.bf16.mxu1 %v1803_v9  ;;  %v1819_v25 = vld [vmem:[%s2290_s1 + $0xc8] sm:$0xff]   ;;  %v1823_v29 = vld [vmem:[%s2290_s1 + $0xc0] sm:$0xff]   ;;  %v1833_v37 = vld [vmem:[%s2290_s1 + $0x1f8] sm:$0xff]  }
  0x15   : > { %v1820_v26 = vld [vmem:[%s2290_s1 + $0x8] sm:$0xff]   ;;  %v1824_v30 = vld [vmem:[%s2290_s1] sm:$0xff]   ;;  %v1834_v38 = vld [vmem:[%s2290_s1 + $0x138] sm:$0xff]  }
  0x16   : > { %1578 = vmatpush3.bf16.msra.mxu0 %v1804_v10  ;;  %v1821_v27 = vld [vmem:[%s2290_s1 + $0x88] sm:$0xff]   ;;  %v1825_v31 = vld [vmem:[%s2290_s1 + $0x80] sm:$0xff]   ;;  %v1835_v39 = vld [vmem:[%s2290_s1 + $0x1b8] sm:$0xff]  }
  0x17   : > { %1618 = vmatpush3.bf16.msra.mxu1 %v1805_v11  ;;  %1579 = vmatprep.subr.bf16.mxu0 %v1806_v12  ;;  %v1826_v32 = vld [vmem:[%s2052_s13] ss:$36 sps:$4 sm:$0xff]   ;;  %v1829_v34 = vld [vmem:[%s2052_s13 + $0x8] ss:$36 sps:$4 sm:$0xff]   ;;  %v1836_v40 = vld [vmem:[%s2290_s1 + $0x170] sm:$0xff]  }
  0x18   : > { %1619 = vmatprep.subr.bf16.mxu1 %v1807_v13  ;;  %v1828_v33 = vld [vmem:[%s2052_s13 + $0x4] ss:$36 sps:$4 sm:$0xff]   ;;  %v1831_v35 = vld [vmem:[%s2052_s13 + $0xc] ss:$36 sps:$4 sm:$0xff]   ;;  %v1842_v45 = vld [vmem:[%s2052_s13 + $0x54] ss:$36 sps:$4 sm:$0xff]  }
  0x19   : > { %1017 = vmatprep.mubr.bf16.mxu0 %v1828_v33  ;;  %1082 = vmatprep.mubr.bf16.mxu1 %v1831_v35  ;;  %v1837_v41 = vld [vmem:[%s2290_s1 + $0x1f0] sm:$0xff]   ;;  %v1844_v46 = vld [vmem:[%s2052_s13 + $0x48] ss:$36 sps:$4 sm:$0xff]   ;;  %v1850_v52 = vld [vmem:[%s2290_s1 + $0x160] sm:$0xff]  }
  0x1a   : > { %1580 = vmatpush3.bf16.msra.mxu0 %v1808_v14  ;;  %v1838_v42 = vld [vmem:[%s2290_s1 + $0x130] sm:$0xff]   ;;  %v1846_v48 = vld [vmem:[%s2290_s1 + $0x168] sm:$0xff]   ;;  %v1851_v53 = vld [vmem:[%s2290_s1 + $0x1e0] sm:$0xff]  }
  0x1b   : > { %1620 = vmatpush3.bf16.msra.mxu1 %v1809_v15  ;;  %1581 = vmatprep.subr.bf16.mxu0 %v1810_v16  ;;  %v1839_v43 = vld [vmem:[%s2290_s1 + $0x1b0] sm:$0xff]   ;;  %v1847_v49 = vld [vmem:[%s2290_s1 + $0x1e8] sm:$0xff]   ;;  %v1852_v54 = vld [vmem:[%s2290_s1 + $0x120] sm:$0xff]  }
  0x1c   : > { %1621 = vmatprep.subr.bf16.mxu1 %v1811_v17  ;;  %v1840_v44 = vld [vmem:[%s2052_s13 + $0x4c] ss:$36 sps:$4 sm:$0xff]   ;;  %v1853_v55 = vld [vmem:[%s2290_s1 + $0x1a0] sm:$0xff]   ;;  %v1854_v56 = vld [vmem:[%s2052_s13 + $0x94] ss:$36 sps:$4 sm:$0xff]  }
  0x1d   : > { %v1845_v47 = vld [vmem:[%s2052_s13 + $0x50] ss:$36 sps:$4 sm:$0xff]   ;;  %v1848_v50 = vld [vmem:[%s2290_s1 + $0x128] sm:$0xff]   ;;  %v1856_v57 = vld [vmem:[%s2052_s13 + $0x9c] ss:$36 sps:$4 sm:$0xff]  }
  0x1e   : > { %1582 = vmatpush3.bf16.msra.mxu0 %v1812_v18  ;;  %v1849_v51 = vld [vmem:[%s2290_s1 + $0x1a8] sm:$0xff]   ;;  %v1858_v58 = vld [vmem:[%s2052_s13 + $0x90] ss:$36 sps:$4 sm:$0xff]   ;;  %v1859_v59 = vld [vmem:[%s2052_s13 + $0x98] ss:$36 sps:$4 sm:$0xff]  }
  0x1f   : > { %1622 = vmatpush3.bf16.msra.mxu1 %v1813_v19  ;;  %1583 = vmatprep.subr.bf16.mxu0 %v1814_v20  ;;  %v1860_v60 = vld [vmem:[%s2290_s1 + $0x158] sm:$0xff]   ;;  %v1864_v0 = vld [vmem:[%s2290_s1 + $0x150] sm:$0xff]   ;;  %v1870_v5 = vld [vmem:[%s2052_s13 + $0xe4] ss:$36 sps:$4 sm:$0xff]  }
  0x20   : > { %1623 = vmatprep.subr.bf16.mxu1 %v1815_v21  ;;  %v1861_v61 = vld [vmem:[%s2290_s1 + $0x1d8] sm:$0xff]   ;;  %v1865_v1 = vld [vmem:[%s2290_s1 + $0x1d0] sm:$0xff]   ;;  %v1873_v7 = vld [vmem:[%s2052_s13 + $0xe0] ss:$36 sps:$4 sm:$0xff]  }
  0x21   : > { %v1862_v62 = vld [vmem:[%s2290_s1 + $0x118] sm:$0xff]   ;;  %v1866_v2 = vld [vmem:[%s2290_s1 + $0x110] sm:$0xff]   ;;  %v1874_v8 = vld [vmem:[%s2290_s1 + $0x148] sm:$0xff]  }
  0x22   : > { %1584 = vmatpush3.bf16.msra.mxu0 %v1816_v22  ;;  %v1863_v63 = vld [vmem:[%s2290_s1 + $0x198] sm:$0xff]   ;;  %v1867_v3 = vld [vmem:[%s2290_s1 + $0x190] sm:$0xff]   ;;  %v1875_v9 = vld [vmem:[%s2290_s1 + $0x1c8] sm:$0xff]  }
  0x23   : > { %1624 = vmatpush3.bf16.msra.mxu1 %v1817_v23  ;;  %1585 = vmatprep.subr.bf16.mxu0 %v1818_v24  ;;  %v1868_v4 = vld [vmem:[%s2052_s13 + $0xdc] ss:$36 sps:$4 sm:$0xff]   ;;  %v1876_v10 = vld [vmem:[%s2290_s1 + $0x108] sm:$0xff]   ;;  %v1882_v16 = vld [vmem:[%s2052_s13 + $0x10] ss:$36 sps:$4 sm:$0xff]  }
  0x24   : > { %1625 = vmatprep.subr.bf16.mxu1 %v1819_v25  ;;  %v1872_v6 = vld [vmem:[%s2052_s13 + $0xd8] ss:$36 sps:$4 sm:$0xff]   ;;  %v1877_v11 = vld [vmem:[%s2290_s1 + $0x188] sm:$0xff]   ;;  %v1878_v12 = vld [vmem:[%s2290_s1 + $0x140] sm:$0xff]  }
  0x25   : > { %v1879_v13 = vld [vmem:[%s2290_s1 + $0x1c0] sm:$0xff]   ;;  %v1884_v17 = vld [vmem:[%s2052_s13 + $0x14] ss:$36 sps:$4 sm:$0xff]   ;;  %v1906_v33 = vld [vmem:[%s2052_s13 + $0xec] ss:$36 sps:$4 sm:$0xff]  }
  0x26   : > { %1586 = vmatpush3.bf16.msra.mxu0 %v1820_v26  ;;  %v1880_v14 = vld [vmem:[%s2290_s1 + $0x100] sm:$0xff]   ;;  %v1885_v18 = vld [vmem:[%s2052_s13 + $0x18] ss:$36 sps:$4 sm:$0xff]   ;;  %v1889_v21 = vld [vmem:[%s2290_s1 + $0x230] sm:$0xff]  }
  0x27   : > { %1626 = vmatpush3.bf16.msra.mxu1 %v1821_v27  ;;  %1587 = vmatprep.subr.bf16.mxu0 %v1822_v28  ;;  %v1881_v15 = vld [vmem:[%s2290_s1 + $0x180] sm:$0xff]   ;;  %v1888_v20 = vld [vmem:[%s2290_s1 + $0x238] sm:$0xff]   ;;  %v1896_v26 = vld [vmem:[%s2290_s1 + $0x228] sm:$0xff]  }
  0x28   : > { %1627 = vmatprep.subr.bf16.mxu1 %v1823_v29  ;;  %v1887_v19 = vld [vmem:[%s2052_s13 + $0x1c] ss:$36 sps:$4 sm:$0xff]   ;;  %v1892_v23 = vld [vmem:[%s2052_s13 + $0x64] ss:$36 sps:$4 sm:$0xff]   ;;  %v1900_v28 = vld [vmem:[%s2052_s13 + $0xac] ss:$36 sps:$4 sm:$0xff]  }
  0x29   : > { %v1890_v22 = vld [vmem:[%s2052_s13 + $0x5c] ss:$36 sps:$4 sm:$0xff]   ;;  %v1898_v27 = vld [vmem:[%s2052_s13 + $0xa4] ss:$36 sps:$4 sm:$0xff]   ;;  %v1905_v35 = vld [vmem:[%s2290_s1 + $0x210] sm:$0xff]  }
  0x2a   : > { %1588 = vmatpush3.bf16.msra.mxu0 %v1824_v30  ;;  %v1894_v24 = vld [vmem:[%s2052_s13 + $0x58] ss:$36 sps:$4 sm:$0xff]   ;;  %v1895_v25 = vld [vmem:[%s2052_s13 + $0x60] ss:$36 sps:$4 sm:$0xff]  }
  0x2b   : > { %1628 = vmatpush3.bf16.msra.mxu1 %v1825_v31  ;;  %1653 = vmatprep.subr.bf16.mxu0 %v1832_v36  ;;  %v1897_v29 = vld [vmem:[%s2290_s1 + $0x220] sm:$0xff]   ;;  %v1903_v31 = vld [vmem:[%s2052_s13 + $0xa8] ss:$36 sps:$4 sm:$0xff]  }
  0x2c   : > { %1693 = vmatprep.subr.bf16.mxu1 %v1833_v37  ;;  %v1902_v30 = vld [vmem:[%s2052_s13 + $0xa0] ss:$36 sps:$4 sm:$0xff]   ;;  %v1910_v36 = vld [vmem:[%s2052_s13 + $0xe8] ss:$36 sps:$4 sm:$0xff]  }
  0x2d   : > { %1018 = vmatmul.mubr.bf16.vlgmr.msra.gmra.mxu0 %v1826_v32  ;;  %v1904_v32 = vld [vmem:[%s2290_s1 + $0x218] sm:$0xff]   ;;  %v1912_v37 = vld [vmem:[%s2290_s1 + $0x208] sm:$0xff]  }
  0x2e   : > { %1083 = vmatmul.mubr.bf16.vlgmr.msra.gmra.mxu1 %v1829_v34  ;;  %1654 = vmatpush3.bf16.msra.mxu0 %v1834_v38  ;;  %v1908_v34 = vld [vmem:[%s2052_s13 + $0xf4] ss:$36 sps:$4 sm:$0xff]  }
  0x2f   : > { %1694 = vmatpush3.bf16.msra.mxu1 %v1835_v39  ;;  %1655 = vmatprep.subr.bf16.mxu0 %v1836_v40  ;;  %v1911_v38 = vld [vmem:[%s2052_s13 + $0xf0] ss:$36 sps:$4 sm:$0xff]   ;;  %v1914_v39 = vld [vmem:[%s2052_s13 + $0x20] ss:$36 sps:$4 sm:$0xff]  }
  0x30   : > { %1695 = vmatprep.subr.bf16.mxu1 %v1837_v41  ;;  %1025 = vmatprep.mubr.bf16.mxu0 %v1840_v44  ;;  %v1915_v40 = vld [vmem:[%s2052_s13 + $0xb0] ss:$36 sps:$4 sm:$0xff]   ;;  %v1913_v41 = vld [vmem:[%s2290_s1 + $0x200] sm:$0xff]  }
  0x31   : > { %1090 = vmatprep.mubr.bf16.mxu1 %v1842_v45 }
  0x32   : > { %1656 = vmatpush3.bf16.msra.mxu0 %v1838_v42  ;;  %v1916_v42 = vld [vmem:[%s2052_s13 + $0x68] ss:$36 sps:$4 sm:$0xff]  }
  0x33   : > { %1696 = vmatpush3.bf16.msra.mxu1 %v1839_v43  ;;  %1657 = vmatprep.subr.bf16.mxu0 %v1846_v48  ;;  %v1917_v43 = vld [vmem:[%s2052_s13 + $0xf8] ss:$36 sps:$4 sm:$0xff]  }
  0x34   : > { %1697 = vmatprep.subr.bf16.mxu1 %v1847_v49 }
  0x35   : > { %1026 = vmatmul.mubr.bf16.gmra.mxu0 %v1844_v46 }
  0x36   : > { %1091 = vmatmul.mubr.bf16.gmra.mxu1 %v1845_v47  ;;  %1658 = vmatpush3.bf16.msra.mxu0 %v1848_v50 }
  0x37   : > { %1698 = vmatpush3.bf16.msra.mxu1 %v1849_v51  ;;  %1659 = vmatprep.subr.bf16.mxu0 %v1850_v52 }
  0x38   : > { %1699 = vmatprep.subr.bf16.mxu1 %v1851_v53  ;;  %1033 = vmatprep.mubr.bf16.mxu0 %v1854_v56 }
  0x39   : > { %1098 = vmatprep.mubr.bf16.mxu1 %v1856_v57 }
  0x3a   : > { %1660 = vmatpush3.bf16.msra.mxu0 %v1852_v54 }
  0x3b   : > { %1700 = vmatpush3.bf16.msra.mxu1 %v1853_v55  ;;  %1661 = vmatprep.subr.bf16.mxu0 %v1860_v60 }
  0x3c   : > { %1701 = vmatprep.subr.bf16.mxu1 %v1861_v61 }
  0x3d   : > { %1034 = vmatmul.mubr.bf16.gmra.mxu0 %v1858_v58 }
  0x3e   : > { %1099 = vmatmul.mubr.bf16.gmra.mxu1 %v1859_v59  ;;  %1662 = vmatpush3.bf16.msra.mxu0 %v1862_v62 }
  0x3f   : > { %1702 = vmatpush3.bf16.msra.mxu1 %v1863_v63  ;;  %1663 = vmatprep.subr.bf16.mxu0 %v1864_v0 }
  0x40   : > { %1703 = vmatprep.subr.bf16.mxu1 %v1865_v1  ;;  %1041 = vmatprep.mubr.bf16.mxu0 %v1868_v4 }
  0x41   : > { %1106 = vmatprep.mubr.bf16.mxu1 %v1870_v5 }
  0x42   : > { %1664 = vmatpush3.bf16.msra.mxu0 %v1866_v2 }
  0x43   : > { %1704 = vmatpush3.bf16.msra.mxu1 %v1867_v3  ;;  %1665 = vmatprep.subr.bf16.mxu0 %v1874_v8 }
  0x44   : > { %1705 = vmatprep.subr.bf16.mxu1 %v1875_v9 }
  0x45   : > { %1042 = vmatmul.mubr.bf16.gmra.mxu0 %v1872_v6 }
  0x46   : > { %1107 = vmatmul.mubr.bf16.gmra.mxu1 %v1873_v7  ;;  %1666 = vmatpush3.bf16.msra.mxu0 %v1876_v10 }
  0x47   : > { %1706 = vmatpush3.bf16.msra.mxu1 %v1877_v11  ;;  %1667 = vmatprep.subr.bf16.mxu0 %v1878_v12 }
  0x48   : > { %1707 = vmatprep.subr.bf16.mxu1 %v1879_v13  ;;  %1147 = vmatprep.mubr.bf16.mxu0 %v1884_v17 }
  0x49   : > { %1212 = vmatprep.mubr.bf16.mxu1 %v1887_v19 }
  0x4a   : > { %1668 = vmatpush3.bf16.msra.mxu0 %v1880_v14 }
  0x4b   : > { %1708 = vmatpush3.bf16.msra.mxu1 %v1881_v15  ;;  %1745 = vmatprep.subr.bf16.mxu0 %v1888_v20 }
  0x4c   : > { %1769 = vmatprep.subr.bf16.mxu1 %v1888_v20 }
  0x4d   : > { %1148 = vmatmul.mubr.bf16.vlgmr.msra.gmra.mxu0 %v1882_v16 }
  0x4e   : > { %1213 = vmatmul.mubr.bf16.vlgmr.msra.gmra.mxu1 %v1885_v18  ;;  %1746 = vmatpush3.bf16.msra.mxu0 %v1888_v20 }
  0x4f   : > { %1777 = vmatpush3.bf16.msra.mxu1 %v1888_v20  ;;  %1747 = vmatprep.subr.bf16.mxu0 %v1889_v21 }
  0x50   : > { %1770 = vmatprep.subr.bf16.mxu1 %v1889_v21  ;;  %1155 = vmatprep.mubr.bf16.mxu0 %v1890_v22 }
  0x51   : > { %1220 = vmatprep.mubr.bf16.mxu1 %v1892_v23 }
  0x52   : > { %1748 = vmatpush3.bf16.msra.mxu0 %v1889_v21 }
  0x53   : > { %1778 = vmatpush3.bf16.msra.mxu1 %v1889_v21  ;;  %1749 = vmatprep.subr.bf16.mxu0 %v1896_v26 }
  0x54   : > { %1771 = vmatprep.subr.bf16.mxu1 %v1896_v26 }
  0x55   : > { %1156 = vmatmul.mubr.bf16.gmra.mxu0 %v1894_v24 }
  0x56   : > { %1221 = vmatmul.mubr.bf16.gmra.mxu1 %v1895_v25  ;;  %1163 = vmatprep.mubr.bf16.mxu0 %v1898_v27 }
  0x57   : > { %1750 = vmatpush3.bf16.msra.mxu0 %v1896_v26  ;;  %1228 = vmatprep.mubr.bf16.mxu1 %v1900_v28 }
  0x58   : > { %1779 = vmatpush3.bf16.msra.mxu1 %v1896_v26  ;;  %1751 = vmatprep.subr.bf16.mxu0 %v1897_v29 }
  0x59   : > { %1772 = vmatprep.subr.bf16.mxu1 %v1897_v29 }
  0x5b   : > { %1752 = vmatpush3.bf16.msra.mxu0 %v1897_v29 }
  0x5c   : > { %1780 = vmatpush3.bf16.msra.mxu1 %v1897_v29  ;;  %1753 = vmatprep.subr.bf16.mxu0 %v1904_v32 }
  0x5d   : > { %1164 = vmatmul.mubr.bf16.gmra.mxu0 %v1902_v30  ;;  %1773 = vmatprep.subr.bf16.mxu1 %v1904_v32  ;;  %v1423_v30 = vld [vmem:[%s2291_s2] ss:$0 sm:$0xff] }
  0x5e   : > { %1229 = vmatmul.mubr.bf16.gmra.mxu1 %v1903_v31  ;;  %1171 = vmatprep.mubr.bf16.mxu0 %v1906_v33 }
  0x5f   : > { %1754 = vmatpush3.bf16.msra.mxu0 %v1904_v32  ;;  %1236 = vmatprep.mubr.bf16.mxu1 %v1908_v34 }
  0x60   : > { %1781 = vmatpush3.bf16.msra.mxu1 %v1904_v32  ;;  %1755 = vmatprep.subr.bf16.mxu0 %v1905_v35 }
  0x61   : > { %1774 = vmatprep.subr.bf16.mxu1 %v1905_v35 }
  0x63   : > { %1756 = vmatpush3.bf16.msra.mxu0 %v1905_v35 }
  0x64   : > { %1782 = vmatpush3.bf16.msra.mxu1 %v1905_v35  ;;  %1757 = vmatprep.subr.bf16.mxu0 %v1912_v37 }
  0x65   : > { %1172 = vmatmul.mubr.bf16.gmra.mxu0 %v1910_v36  ;;  %1775 = vmatprep.subr.bf16.mxu1 %v1912_v37 }
  0x66   : > { %1237 = vmatmul.mubr.bf16.gmra.mxu1 %v1911_v38  ;;  %1761 = vmatprep.mubr.bf16.mxu0 %v1914_v39 }
  0x67   : > { %1758 = vmatpush3.bf16.msra.mxu0 %v1912_v37  ;;  %1765 = vmatprep.mubr.bf16.mxu1 %v1915_v40 }
  0x68   : > { %1783 = vmatpush3.bf16.msra.mxu1 %v1912_v37  ;;  %1759 = vmatprep.subr.bf16.mxu0 %v1913_v41 }
  0x69   : > { %1776 = vmatprep.subr.bf16.mxu1 %v1913_v41 }
  0x6b   : > { %1760 = vmatpush3.bf16.msra.mxu0 %v1913_v41 }
  0x6c   : > { %1784 = vmatpush3.bf16.msra.mxu1 %v1913_v41 }
  0x6e   : > { %1762 = vmatmul.mubr.bf16.vlgmr.msra.gmra.mxu0 %v1916_v42 }
  0x6f   : > { %1766 = vmatmul.mubr.bf16.vlgmr.msra.gmra.mxu1 %v1917_v43 }
  0xed   : > { %v1589_v44 = vpop.f32.mrf.mxu0 }
  0xee   : > { %v1629_v45 = vpop.f32.mrf.mxu1 }
  0xef   : > { %v1590_v46 = vpop.f32.mrf.mxu0 }
  0xf0   : > { %v1630_v47 = vpop.f32.mrf.mxu1  ;;  %v1591_v29 = vadd.f32 %v1590_v46, %v1589_v44 }
  0xf1   : > { %v1592_v48 = vpop.f32.mrf.mxu0  ;;  %v1631_v42 = vadd.f32 %v1630_v47, %v1629_v45 }
  0xf2   : > { %v2216_v49 = vpop.f32.mrf.mxu1  ;;  %v1020_v38 = vadd.f32 %v1591_v29, %v1423_v30 }
  0xf3   : > { %v1593_v50 = vpop.f32.mrf.mxu0 }
  0xf4   : > { %v2218_v51 = vpop.f32.mrf.mxu1  ;;  %v1594_v33 = vadd.f32 %v1593_v50, %v1592_v48 }
  0xf5   : > { %v1595_v52 = vpop.f32.mrf.mxu0  ;;  %v1634_v50 = vadd.f32 %v2218_v51, %v2216_v49 }
  0xf6   : > { %v2220_v53 = vpop.f32.mrf.mxu1  ;;  %v1023_v44 = vadd.f32 %v1594_v33, %v1423_v30 }
  0xf7   : > { %v1596_v54 = vpop.f32.mrf.mxu0 }
  0xf8   : > { %v1636_v55 = vpop.f32.mrf.mxu1  ;;  %v1597_v34 = vadd.f32 %v1596_v54, %v1595_v52 }
  0xf9   : > { %v1598_v56 = vpop.f32.mrf.mxu0  ;;  %v1637_v52 = vadd.f32 %v1636_v55, %v2220_v53 }
  0xfa   : > { %v2222_v57 = vpop.f32.mrf.mxu1  ;;  %v1028_v46 = vadd.f32 %v1597_v34, %v1423_v30 }
  0xfb   : > { %v1599_v58 = vpop.f32.mrf.mxu0 }
  0xfc   : > { %v2224_v59 = vpop.f32.mrf.mxu1  ;;  %v1600_v39 = vadd.f32 %v1599_v58, %v1598_v56 }
  0xfd   : > { %v1601_v60 = vpop.f32.mrf.mxu0  ;;  %v1640_v45 = vadd.f32 %v2224_v59, %v2222_v57 }
  0xfe   : > { %v2226_v61 = vpop.f32.mrf.mxu1  ;;  %v1031_v48 = vadd.f32 %v1600_v39, %v1423_v30 }
  0xff   : > { %v1602_v62 = vpop.f32.mrf.mxu0 }
 0x100   : > { %v2228_v63 = vpop.f32.mrf.mxu1 }
 0x101   : > { %v1604_v0 = vpop.f32.mrf.mxu0  ;;  %v1643_v55 = vadd.f32 %v2228_v63, %v2226_v61 }
 0x102   : > { %v2230_v1 = vpop.f32.mrf.mxu1 }
 0x103   : > { %v1605_v2 = vpop.f32.mrf.mxu0 }
 0x104   : > { %v2232_v3 = vpop.f32.mrf.mxu1  ;;  %v1606_v54 = vadd.f32 %v1605_v2, %v1604_v0 }
 0x105   : > { %v1607_v4 = vpop.f32.mrf.mxu0 }
 0x106   : > { %v1647_v5 = vpop.f32.mrf.mxu1  ;;  %v1039_v0 = vadd.f32 %v1606_v54, %v1423_v30 }
 0x107   : > { %v1608_v6 = vpop.f32.mrf.mxu0 }
 0x108   : > { %v1648_v7 = vpop.f32.mrf.mxu1  ;;  %v1609_v35 = vadd.f32 %v1608_v6, %v1607_v4 }
 0x109   : > { %v1610_v8 = vpop.f32.mrf.mxu0  ;;  %v1649_v56 = vadd.f32 %v1648_v7, %v1647_v5 }
 0x10a   : > { %v1650_v9 = vpop.f32.mrf.mxu1 }
 0x10b   : > { %v1611_v10 = vpop.f32.mrf.mxu0 }
 0x10c   : > { %v1651_v11 = vpop.f32.mrf.mxu1  ;;  %v1612_v43 = vadd.f32 %v1611_v10, %v1610_v8  ;;  %v1093_v8 = vadd.f32 %v1637_v52, %v1028_v46 }
 0x10d   : > { %v1669_v12 = vpop.f32.mrf.mxu0  ;;  %v1652_v49 = vadd.f32 %v1651_v11, %v1650_v9 }
 0x10e   : > { %v2234_v13 = vpop.f32.mrf.mxu1  ;;  %v1047_v47 = vadd.f32 %v1612_v43, %v1423_v30 }
 0x10f   : > { %v1670_v14 = vpop.f32.mrf.mxu0 }
 0x110   : > { %v2236_v15 = vpop.f32.mrf.mxu1  ;;  %v1671_v51 = vadd.f32 %v1670_v14, %v1669_v12  ;;  %v1112_v7 = vadd.f32 %v1652_v49, %v1047_v47 }
 0x111   : > { %v2238_v16 = vpop.f32.mrf.mxu0 }
 0x112   : > { %v2240_v17 = vpop.f32.mrf.mxu1 }
 0x113   : > { %2293 = vst [vmem:[#allocation2_spill] sm:$0xff] %v2240_v17  ;;  %v1673_v18 = vpop.f32.mrf.mxu0  ;;  %v1044_v17 = vadd.f32 %v1609_v35, %v1423_v30  ;;  %v1096_v35 = vadd.f32 %v1640_v45, %v1031_v48 }
 0x114   : > { %v2242_v19 = vpop.f32.mrf.mxu1 }
 0x115   : > { %2294 = vst [vmem:[#allocation3_spill] sm:$0xff] %v2242_v19  ;;  %v1675_v20 = vpop.f32.mrf.mxu0  ;;  %v1603_v19 = vadd.f32 %v1602_v62, %v1601_v60  ;;  %v1088_v62 = vadd.f32 %v1634_v50, %v1023_v44  ;;  %v1109_v29 = vadd.f32 %v1649_v56, %v1044_v17 }
 0x116   : > { %v2244_v21 = vpop.f32.mrf.mxu1 }
 0x117   : > { %v1676_v22 = vpop.f32.mrf.mxu0  ;;  %v1036_v10 = vadd.f32 %v1603_v19, %v1423_v30 }
 0x118   : > { %v2246_v23 = vpop.f32.mrf.mxu1  ;;  %v1677_v6 = vadd.f32 %v1676_v22, %v1675_v20  ;;  %v1674_v20 = vadd.f32 %v1673_v18, %v2238_v16  ;;  %v1711_v18 = vadd.f32 %v2236_v15, %v2234_v13 }
 0x119   : > { %v1678_v24 = vpop.f32.mrf.mxu0  ;;  %v1101_v17 = vadd.f32 %v1643_v55, %v1036_v10  ;;  %v1717_v61 = vadd.f32 %v2246_v23, %v2244_v21 }
 0x11a   : > { %v2248_v25 = vpop.f32.mrf.mxu1  ;;  %v1158_v22 = vadd.f32 %v1677_v6, %v1093_v8  ;;  %v2301_v44 = vld [vmem:[#allocation2_spill] sm:$0xff] }
 0x11b   : > { %2295 = vst [vmem:[#allocation4_spill] sm:$0xff] %v2248_v25  ;;  %v1679_v26 = vpop.f32.mrf.mxu0  ;;  %v1085_v25 = vadd.f32 %v1631_v42, %v1020_v38  ;;  %v1153_v38 = vadd.f32 %v1674_v20, %v1088_v62 }
 0x11c   : > { %v2250_v27 = vpop.f32.mrf.mxu1  ;;  %v1680_v53 = vadd.f32 %v1679_v26, %v1678_v24  ;;  %v2302_v46 = vld [vmem:[#allocation3_spill] sm:$0xff] }
 0x11d   : > { %2296 = vst [vmem:[#allocation5_spill] sm:$0xff] %v2250_v27  ;;  %v1681_v28 = vpop.f32.mrf.mxu0  ;;  %v1150_v14 = vadd.f32 %v1671_v51, %v1085_v25  ;;  %v1714_v48 = vadd.f32 %v2302_v46, %v2301_v44 }
 0x11e   : > { %v2255_v31 = vpop.f32.mrf.mxu1  ;;  %v1161_v63 = vadd.f32 %v1680_v53, %v1096_v35 }
 0x11f   : > { %2297 = vst [vmem:[#allocation6_spill] sm:$0xff] %v2255_v31  ;;  %v1682_v32 = vpop.f32.mrf.mxu0  ;;  %v1215_v52 = vadd.f32 %v1711_v18, %v1150_v14 }
 0x120   : > { %v2257_v36 = vpop.f32.mrf.mxu1  ;;  %v1683_v2 = vadd.f32 %v1682_v32, %v1681_v28 }
 0x121   : > { %v1684_v37 = vpop.f32.mrf.mxu0 }
 0x122   : > { %v2259_v40 = vpop.f32.mrf.mxu1  ;;  %v1166_v28 = vadd.f32 %v1683_v2, %v1101_v17  ;;  %v2298_v39 = vld [vmem:[#allocation4_spill] sm:$0xff] }
 0x123   : > { %v1685_v41 = vpop.f32.mrf.mxu0 }
 0x124   : > { %v1725_v27 = vpop.f32.mrf.mxu1  ;;  %v1686_v9 = vadd.f32 %v1685_v41, %v1684_v37  ;;  %v1223_v37 = vadd.f32 %v1717_v61, %v1158_v22 }
 0x125   : > { %v1687_v31 = vpop.f32.mrf.mxu0  ;;  %v1726_v15 = vadd.f32 %v1725_v27, %v2259_v40 }
 0x126   : > { %v1727_v58 = vpop.f32.mrf.mxu1  ;;  %v2300_v41 = vld [vmem:[#allocation6_spill] sm:$0xff] }
 0x127   : > { %v1688_v4 = vpop.f32.mrf.mxu0  ;;  %v1723_v21 = vadd.f32 %v2257_v36, %v2300_v41  ;;  %v1218_v36 = vadd.f32 %v1714_v48, %v1153_v38 }
 0x128   : > { %v1689_v60 = vadd.f32 %v1688_v4, %v1687_v31  ;;  %v1728_v33 = vpop.f32.mrf.mxu1  ;;  %v1646_v31 = vadd.f32 %v2232_v3, %v2230_v1  ;;  %v2299_v1 = vld [vmem:[#allocation5_spill] sm:$0xff] }
 0x129   : > { %v1690_v34 = vpop.f32.mrf.mxu0  ;;  %v1729_v11 = vadd.f32 %v1728_v33, %v1727_v58  ;;  %v1720_v3 = vadd.f32 %v2299_v1, %v2298_v39  ;;  %v1231_v58 = vadd.f32 %v1723_v21, %v1166_v28 }
 0x12a   : > { %v1174_v5 = vadd.f32 %v1689_v60, %v1109_v29  ;;  %v1730_v57 = vpop.f32.mrf.mxu1  ;;  %v1104_v26 = vadd.f32 %v1646_v31, %v1039_v0 }
 0x12b   : > { %v1691_v59 = vpop.f32.mrf.mxu0  ;;  %v1226_v13 = vadd.f32 %v1720_v3, %v1161_v63 }
 0x12c   : > { %v1692_v19 = vadd.f32 %v1691_v59, %v1690_v34  ;;  %v1731_v12 = vpop.f32.mrf.mxu1  ;;  %v1239_v16 = vadd.f32 %v1729_v11, %v1174_v5  ;;  %v1169_v23 = vadd.f32 %v1686_v9, %v1104_v26 }
 0x12d   : > { %v1732_v30 = vadd.f32 %v1731_v12, %v1730_v57 }
 0x12e   : > { %v1177_v24 = vadd.f32 %v1692_v19, %v1112_v7  ;;  %v1763_v32 = vpop.f32.mrf.mxu0  ;;  %v1234_v10 = vadd.f32 %v1726_v15, %v1169_v23 }
 0x12f   : > { %v1767_v25 = vpop.f32.mrf.mxu1  ;;  %v1288_v50 = vadd.f32 %v1763_v32, %v1223_v37 }
 0x130   : > { %v1279_v42 = vpop.f32.mrf.mxu0  ;;  %v1242_v43 = vadd.f32 %v1732_v30, %v1177_v24  ;;  %v1304_v56 = vadd.f32 %v1767_v25, %v1239_v16 }
 0x131   : > { %v1295_v54 = vpop.f32.mrf.mxu1  ;;  %v1280_v45 = vadd.f32 %v1279_v42, %v1215_v52  ;;  %v1312_v29 = vmax.f32 %v1288_v50, 0.0 }
 0x132   : > { %v1764_v4 = vpop.f32.mrf.mxu0  ;;  %v1296_v60 = vadd.f32 %v1295_v54, %v1231_v58  ;;  %v1316_v49 = vmax.f32 %v1304_v56, 0.0 }
 0x133   : > { %v1291_v47 = vadd.f32 %v1764_v4, %v1226_v13  ;;  %v1768_v6 = vpop.f32.mrf.mxu1  ;;  %v1310_v51 = vmax.f32 %v1280_v45, 0.0 }
 0x134   : > { %v1307_v62 = vadd.f32 %v1768_v6, %v1242_v43  ;;  %v1282_v8 = vpop.f32.mrf.mxu0  ;;  %v1314_v0 = vmax.f32 %v1296_v60, 0.0 }
 0x135   : > { %v1313_v33 = vmax.f32 %v1291_v47, 0.0  ;;  %v1283_v34 = vadd.f32 %v1282_v8, %v1218_v36  ;;  %v1298_v35 = vpop.f32.mrf.mxu1 }
 0x136   : > { %v1317_v27 = vmax.f32 %v1307_v62, 0.0  ;;  %v1299_v40 = vadd.f32 %v1298_v35, %v1234_v10 }
 0x137   : > { %v1558_v53 = vpack.c.bf16 %v1313_v33, %v1312_v29  ;;  %v1311_v55 = vmax.f32 %v1283_v34, 0.0 }
 0x138   : > { %v1568_v2 = vpack.c.bf16 %v1317_v27, %v1316_v49  ;;  %v1315_v5 = vmax.f32 %v1299_v40, 0.0 }
 0x139   : > { %1570 = vst [vmem:[%s175_s20 + $0x8] sm:$0xff] %v1558_v53   ;;  %v1553_v57 = vpack.c.bf16 %v1311_v55, %v1310_v51 }
 0x13a   : > { %1572 = vst [vmem:[%s175_s20 + $0x18] sm:$0xff] %v1568_v2   ;;  %v1563_v59 = vpack.c.bf16 %v1315_v5, %v1314_v0 }
 0x13b   : > { %1554 = vst [vmem:[%s175_s20] sm:$0xff] %v1553_v57  }
 0x13c   : > { %1571 = vst [vmem:[%s175_s20 + $0x10] sm:$0xff] %v1563_v59  }
 0x13d PF: > { %s13_s12 = sadd.s32 1, %s1924_s12  }
 0x13e   : > { %p10_p4 = scmp.ge.s32.totalorder %s13_s12, 4  }
 0x140   :  { %12 = sbr.rel (!%p10_p4) target bundleno = 1 (0x1), region = 62 }

// kernel: bottleneck_forward.6
= control target key start
LH: loop header
LB: loop body
LE: loop exit
PB: predicated region body
PF: predicated region fallthrough
CT: control target
= control target key end

     0   :  { %s602_s12 = smov 0   ;;  %s659_s0 = inlined_call_operand.vmem [shape: bf16[128,128], index: 0, kind: input, shape index: {}]   ;;  %s660_s1 = inlined_call_operand.vmem [shape: bf16[128,128], index: 1, kind: input, shape index: {}]   ;;  %s661_s2 = inlined_call_operand.vmem [shape: f32[1,128], index: 2, kind: input, shape index: {}]   ;;  %s662_s3 = inlined_call_operand.vmem [shape: bf16[128,128], index: 3, kind: output, shape index: {}]  }
   0x1 LB: > { %s439_s13 = sadd.s32 4294967295, %s580_s12   ;;  %p443_p0 = scmp.ge.s32.totalorder %s580_s12, 1  ;;  %s580_s12 = sphi %s602_s12, %s13_s12  }
   0x2   : > { %p138_p1 = scmp.lt.s32.totalorder %s580_s12, 3 }
   0x4   : > { %p139_p2 = pnand %p443_p0, %p138_p1 }
   0x5   : > { %s444_s16 = sshll.u32 (!%p139_p2), %s439_s13, 3 }
   0x6   : > { %142 = sbr.rel (%p139_p2) target bundleno = 248 (0xf8), region = 32  ;;  %p163_p3 = scmp.lt.s32.totalorder (!%p139_p2), %s444_s16, 15 }
   0xb   : > { %v562_v0 = vld [vmem:[%s660_s1 + $0x38] sm:$0xff]   ;;  %v563_v1 = vld [vmem:[%s660_s1 + $0x30] sm:$0xff]   ;;  %s664_s16 = smov (!%p163_p3, %s444_s16), 15  ;;  %v564_v2 = vld [vmem:[%s660_s1 + $0x28] sm:$0xff]  }
   0xc   : > { %514 = vmatprep.subr.bf16.mxu0 %v562_v0  ;;  %538 = vmatprep.subr.bf16.mxu1 %v562_v0  ;;  %s445_s21 = sshll.u32 %s664_s16, 2  ;;  %v565_v3 = vld [vmem:[%s660_s1 + $0x20] sm:$0xff]   ;;  %v566_v6 = vld [vmem:[%s660_s1 + $0x18] sm:$0xff]   ;;  %v567_v7 = vld [vmem:[%s660_s1 + $0x10] sm:$0xff]  }
   0xd   : > { %515 = vmatpush3.bf16.msra.mxu0 %v562_v0  ;;  %546 = vmatpush3.bf16.msra.mxu1 %v562_v0  ;;  %s627_s24 = scalar_lea.vmem %s659_s0, %s445_s21  ;;  %v568_v8 = vld [vmem:[%s660_s1 + $0x8] sm:$0xff]   ;;  %v569_v9 = vld [vmem:[%s660_s1] sm:$0xff]   ;;  %s172_s13 = scalar_lea.vmem %s662_s3, %s445_s21 }
   0xe   : > { %516 = vmatprep.subr.bf16.mxu0 %v563_v1  ;;  %539 = vmatprep.subr.bf16.mxu1 %v563_v1  ;;  %v570_v4 = vld [vmem:[%s627_s24] sm:$0xff]   ;;  %v571_v5 = vld [vmem:[%s627_s24 + $0x10] sm:$0xff]   ;;  %v572_v10 = vld [vmem:[%s627_s24 + $0x8] sm:$0xff]  }
   0xf   : > { %530 = vmatprep.mubr.bf16.mxu0 %v570_v4  ;;  %534 = vmatprep.mubr.bf16.mxu1 %v571_v5  ;;  %v573_v11 = vld [vmem:[%s627_s24 + $0x18] sm:$0xff]   ;;  %v448_v14 = vld [vmem:[%s661_s2] ss:$0 sm:$0xff] }
  0x11   : > { %517 = vmatpush3.bf16.msra.mxu0 %v563_v1  ;;  %547 = vmatpush3.bf16.msra.mxu1 %v563_v1 }
  0x12   : > { %518 = vmatprep.subr.bf16.mxu0 %v564_v2  ;;  %540 = vmatprep.subr.bf16.mxu1 %v564_v2 }
  0x15   : > { %519 = vmatpush3.bf16.msra.mxu0 %v564_v2  ;;  %548 = vmatpush3.bf16.msra.mxu1 %v564_v2 }
  0x16   : > { %520 = vmatprep.subr.bf16.mxu0 %v565_v3  ;;  %541 = vmatprep.subr.bf16.mxu1 %v565_v3 }
  0x19   : > { %521 = vmatpush3.bf16.msra.mxu0 %v565_v3  ;;  %549 = vmatpush3.bf16.msra.mxu1 %v565_v3 }
  0x1a   : > { %522 = vmatprep.subr.bf16.mxu0 %v566_v6  ;;  %542 = vmatprep.subr.bf16.mxu1 %v566_v6 }
  0x1d   : > { %523 = vmatpush3.bf16.msra.mxu0 %v566_v6  ;;  %550 = vmatpush3.bf16.msra.mxu1 %v566_v6 }
  0x1e   : > { %524 = vmatprep.subr.bf16.mxu0 %v567_v7  ;;  %543 = vmatprep.subr.bf16.mxu1 %v567_v7 }
  0x21   : > { %525 = vmatpush3.bf16.msra.mxu0 %v567_v7  ;;  %551 = vmatpush3.bf16.msra.mxu1 %v567_v7 }
  0x22   : > { %526 = vmatprep.subr.bf16.mxu0 %v568_v8  ;;  %544 = vmatprep.subr.bf16.mxu1 %v568_v8 }
  0x25   : > { %527 = vmatpush3.bf16.msra.mxu0 %v568_v8  ;;  %552 = vmatpush3.bf16.msra.mxu1 %v568_v8 }
  0x26   : > { %528 = vmatprep.subr.bf16.mxu0 %v569_v9  ;;  %545 = vmatprep.subr.bf16.mxu1 %v569_v9 }
  0x29   : > { %529 = vmatpush3.bf16.msra.mxu0 %v569_v9  ;;  %553 = vmatpush3.bf16.msra.mxu1 %v569_v9 }
  0x2c   : > { %531 = vmatmul.mubr.bf16.vlgmr.msra.gmra.mxu0 %v572_v10  ;;  %535 = vmatmul.mubr.bf16.vlgmr.msra.gmra.mxu1 %v573_v11 }
  0xec   : > { %v532_v12 = vpop.f32.mrf.mxu0  ;;  %v536_v13 = vpop.f32.mrf.mxu1 }
  0xed   : > { %v321_v19 = vadd.f32 %v532_v12, %v448_v14  ;;  %v337_v20 = vadd.f32 %v536_v13, %v448_v14 }
  0xee   : > { %v312_v15 = vpop.f32.mrf.mxu0  ;;  %v328_v16 = vpop.f32.mrf.mxu1 }
  0xef   : > { %v313_v23 = vadd.f32 %v448_v14, %v312_v15  ;;  %v329_v24 = vadd.f32 %v448_v14, %v328_v16 }
  0xf0   : > { %v533_v17 = vpop.f32.mrf.mxu0  ;;  %v537_v18 = vpop.f32.mrf.mxu1 }
  0xf1   : > { %v324_v21 = vadd.f32 %v533_v17, %v448_v14  ;;  %v340_v22 = vadd.f32 %v537_v18, %v448_v14 }
  0xf2   : > { %v315_v25 = vpop.f32.mrf.mxu0  ;;  %v331_v26 = vpop.f32.mrf.mxu1 }
  0xf3   : > { %v487_v27 = vpack.c.bf16 %v324_v21, %v321_v19  ;;  %v497_v28 = vpack.c.bf16 %v340_v22, %v337_v20  ;;  %v316_v29 = vadd.f32 %v448_v14, %v315_v25  ;;  %v332_v30 = vadd.f32 %v448_v14, %v331_v26 }
  0xf5   : > { %499 = vst [vmem:[%s172_s13 + $0x8] sm:$0xff] %v487_v27   ;;  %501 = vst [vmem:[%s172_s13 + $0x18] sm:$0xff] %v497_v28   ;;  %v482_v31 = vpack.c.bf16 %v316_v29, %v313_v23  ;;  %v492_v32 = vpack.c.bf16 %v332_v30, %v329_v24 }
  0xf7   : > { %483 = vst [vmem:[%s172_s13] sm:$0xff] %v482_v31   ;;  %500 = vst [vmem:[%s172_s13 + $0x10] sm:$0xff] %v492_v32  }
  0xf8 PF: > { %s13_s12 = sadd.s32 1, %s580_s12  }
  0xf9   : > { %p10_p4 = scmp.ge.s32.totalorder %s13_s12, 4  }
  0xfb   :  { %12 = sbr.rel (!%p10_p4) target bundleno = 1 (0x1), region = 62 }

// kernel: bottleneck_forward.7
= control target key start
LH: loop header
LB: loop body
LE: loop exit
PB: predicated region body
PF: predicated region fallthrough
CT: control target
= control target key end

     0   :  { %s650_s15 = smov 0   ;;  %s721_s0 = inlined_call_operand.vmem [shape: bf16[128,128], index: 0, kind: input, shape index: {}]   ;;  %s722_s1 = inlined_call_operand.vmem [shape: bf16[128,128], index: 1, kind: input, shape index: {}]   ;;  %s723_s2 = inlined_call_operand.vmem [shape: f32[1,128], index: 2, kind: input, shape index: {}]   ;;  %s724_s3 = inlined_call_operand.vmem [shape: bf16[128,128], index: 3, kind: input, shape index: {}]   ;;  %s725_s4 = inlined_call_operand.vmem [shape: f32[128,128], index: 4, kind: output, shape index: {}]  }
   0x1 LB: > { %s500_s16 = sadd.s32 4294967295, %s623_s15   ;;  %p504_p0 = scmp.ge.s32.totalorder %s623_s15, 1  ;;  %s623_s15 = sphi %s650_s15, %s14_s15  }
   0x2   : > { %p174_p1 = scmp.lt.s32.totalorder %s623_s15, 3 }
   0x4   : > { %p175_p2 = pnand %p504_p0, %p174_p1 }
   0x5   : > { %s505_s19 = sshll.u32 (!%p175_p2), %s500_s16, 3 }
   0x6   : > { %178 = sbr.rel (%p175_p2) target bundleno = 250 (0xfa), region = 36  ;;  %p206_p3 = scmp.lt.s32.totalorder (!%p175_p2), %s505_s19, 15 }
   0xb   : > { %v605_v0 = vld [vmem:[%s722_s1 + $0x38] sm:$0xff]   ;;  %v606_v1 = vld [vmem:[%s722_s1 + $0x30] sm:$0xff]   ;;  %s727_s19 = smov (!%p206_p3, %s505_s19), 15  ;;  %v607_v2 = vld [vmem:[%s722_s1 + $0x28] sm:$0xff]  }
   0xc   : > { %557 = vmatprep.subr.bf16.mxu0 %v605_v0  ;;  %581 = vmatprep.subr.bf16.mxu1 %v605_v0  ;;  %s506_s24 = sshll.u32 %s727_s19, 2  ;;  %v608_v3 = vld [vmem:[%s722_s1 + $0x20] sm:$0xff]   ;;  %v609_v6 = vld [vmem:[%s722_s1 + $0x18] sm:$0xff]   ;;  %v610_v7 = vld [vmem:[%s722_s1 + $0x10] sm:$0xff]   ;;  %s510_s18 = sshll.u32 %s727_s19, 3 }
   0xd   : > { %558 = vmatpush3.bf16.msra.mxu0 %v605_v0  ;;  %589 = vmatpush3.bf16.msra.mxu1 %v605_v0  ;;  %s675_s27 = scalar_lea.vmem %s721_s0, %s506_s24  ;;  %v611_v8 = vld [vmem:[%s722_s1 + $0x8] sm:$0xff]   ;;  %v612_v9 = vld [vmem:[%s722_s1] sm:$0xff]   ;;  %s215_s14 = scalar_lea.vmem %s724_s3, %s506_s24 }
   0xe   : > { %559 = vmatprep.subr.bf16.mxu0 %v606_v1  ;;  %582 = vmatprep.subr.bf16.mxu1 %v606_v1  ;;  %v613_v4 = vld [vmem:[%s675_s27] sm:$0xff]   ;;  %v614_v5 = vld [vmem:[%s675_s27 + $0x10] sm:$0xff]   ;;  %v615_v10 = vld [vmem:[%s675_s27 + $0x8] sm:$0xff]   ;;  %s708_s22 = scalar_lea.vmem %s725_s4, %s510_s18 }
   0xf   : > { %573 = vmatprep.mubr.bf16.mxu0 %v613_v4  ;;  %577 = vmatprep.mubr.bf16.mxu1 %v614_v5  ;;  %v616_v11 = vld [vmem:[%s675_s27 + $0x18] sm:$0xff]   ;;  %v542_v12 = vld [vmem:[%s215_s14 + $0x8] sm:$0xff]   ;;  %v511_v14 = vld [vmem:[%s723_s2] ss:$0 sm:$0xff] }
  0x10   : > { %v544_v13 = vld [vmem:[%s215_s14 + $0x18] sm:$0xff]   ;;  %v527_v15 = vld [vmem:[%s215_s14] sm:$0xff]   ;;  %v543_v16 = vld [vmem:[%s215_s14 + $0x10] sm:$0xff]   ;;  %v532_v17 = vunpack.c.l.bf16 %v542_v12  ;;  %v533_v32 = vunpack.c.h.bf16 %v542_v12 }
  0x11   : > { %560 = vmatpush3.bf16.msra.mxu0 %v606_v1  ;;  %590 = vmatpush3.bf16.msra.mxu1 %v606_v1  ;;  %v540_v18 = vunpack.c.l.bf16 %v544_v13  ;;  %v528_v23 = vunpack.c.l.bf16 %v527_v15  ;;  %v536_v24 = vunpack.c.l.bf16 %v543_v16  ;;  %v541_v34 = vunpack.c.h.bf16 %v544_v13 }
  0x12   : > { %561 = vmatprep.subr.bf16.mxu0 %v607_v2  ;;  %583 = vmatprep.subr.bf16.mxu1 %v607_v2  ;;  %v529_v35 = vunpack.c.h.bf16 %v527_v15  ;;  %v537_v36 = vunpack.c.h.bf16 %v543_v16 }
  0x15   : > { %562 = vmatpush3.bf16.msra.mxu0 %v607_v2  ;;  %591 = vmatpush3.bf16.msra.mxu1 %v607_v2 }
  0x16   : > { %563 = vmatprep.subr.bf16.mxu0 %v608_v3  ;;  %584 = vmatprep.subr.bf16.mxu1 %v608_v3 }
  0x19   : > { %564 = vmatpush3.bf16.msra.mxu0 %v608_v3  ;;  %592 = vmatpush3.bf16.msra.mxu1 %v608_v3 }
  0x1a   : > { %565 = vmatprep.subr.bf16.mxu0 %v609_v6  ;;  %585 = vmatprep.subr.bf16.mxu1 %v609_v6 }
  0x1d   : > { %566 = vmatpush3.bf16.msra.mxu0 %v609_v6  ;;  %593 = vmatpush3.bf16.msra.mxu1 %v609_v6 }
  0x1e   : > { %567 = vmatprep.subr.bf16.mxu0 %v610_v7  ;;  %586 = vmatprep.subr.bf16.mxu1 %v610_v7 }
  0x21   : > { %568 = vmatpush3.bf16.msra.mxu0 %v610_v7  ;;  %594 = vmatpush3.bf16.msra.mxu1 %v610_v7 }
  0x22   : > { %569 = vmatprep.subr.bf16.mxu0 %v611_v8  ;;  %587 = vmatprep.subr.bf16.mxu1 %v611_v8 }
  0x25   : > { %570 = vmatpush3.bf16.msra.mxu0 %v611_v8  ;;  %595 = vmatpush3.bf16.msra.mxu1 %v611_v8 }
  0x26   : > { %571 = vmatprep.subr.bf16.mxu0 %v612_v9  ;;  %588 = vmatprep.subr.bf16.mxu1 %v612_v9 }
  0x29   : > { %572 = vmatpush3.bf16.msra.mxu0 %v612_v9  ;;  %596 = vmatpush3.bf16.msra.mxu1 %v612_v9 }
  0x2c   : > { %574 = vmatmul.mubr.bf16.vlgmr.msra.gmra.mxu0 %v615_v10  ;;  %578 = vmatmul.mubr.bf16.vlgmr.msra.gmra.mxu1 %v616_v11 }
  0xec   : > { %v575_v19 = vpop.f32.mrf.mxu0  ;;  %v579_v20 = vpop.f32.mrf.mxu1 }
  0xed   : > { %v370_v21 = vadd.f32 %v575_v19, %v511_v14  ;;  %v386_v22 = vadd.f32 %v579_v20, %v511_v14 }
  0xee   : > { %v361_v25 = vpop.f32.mrf.mxu0  ;;  %v377_v26 = vpop.f32.mrf.mxu1 }
  0xef   : > { %v410_v27 = vadd.f32 %v532_v17, %v370_v21  ;;  %v414_v28 = vadd.f32 %v540_v18, %v386_v22  ;;  %v362_v29 = vadd.f32 %v511_v14, %v361_v25  ;;  %v378_v30 = vadd.f32 %v511_v14, %v377_v26 }
  0xf0   : > { %v576_v31 = vpop.f32.mrf.mxu0  ;;  %v580_v33 = vpop.f32.mrf.mxu1 }
  0xf1   : > { %v418_v37 = vmax.f32 %v410_v27, 0.0  ;;  %v422_v38 = vmax.f32 %v414_v28, 0.0  ;;  %v408_v39 = vadd.f32 %v528_v23, %v362_v29  ;;  %v412_v40 = vadd.f32 %v536_v24, %v378_v30 }
  0xf2   : > { %v373_v41 = vadd.f32 %v576_v31, %v511_v14  ;;  %v389_v42 = vadd.f32 %v580_v33, %v511_v14  ;;  %v364_v43 = vpop.f32.mrf.mxu0  ;;  %v380_v44 = vpop.f32.mrf.mxu1 }
  0xf3   : > { %426 = vst [vmem:[%s708_s22 + $0x10] sm:$0xff] %v418_v37  ;;  %430 = vst [vmem:[%s708_s22 + $0x30] sm:$0xff] %v422_v38  ;;  %v416_v45 = vmax.f32 %v408_v39, 0.0  ;;  %v420_v46 = vmax.f32 %v412_v40, 0.0  ;;  %v365_v47 = vadd.f32 %v511_v14, %v364_v43  ;;  %v381_v48 = vadd.f32 %v511_v14, %v380_v44 }
  0xf4   : > { %v411_v49 = vadd.f32 %v533_v32, %v373_v41  ;;  %v415_v50 = vadd.f32 %v541_v34, %v389_v42 }
  0xf5   : > { %424 = vst [vmem:[%s708_s22] sm:$0xff] %v416_v45  ;;  %428 = vst [vmem:[%s708_s22 + $0x20] sm:$0xff] %v420_v46  ;;  %v409_v51 = vadd.f32 %v529_v35, %v365_v47  ;;  %v413_v52 = vadd.f32 %v537_v36, %v381_v48 }
  0xf6   : > { %v419_v53 = vmax.f32 %v411_v49, 0.0  ;;  %v423_v54 = vmax.f32 %v415_v50, 0.0 }
  0xf7   : > { %v417_v55 = vmax.f32 %v409_v51, 0.0  ;;  %v421_v56 = vmax.f32 %v413_v52, 0.0 }
  0xf8   : > { %427 = vst [vmem:[%s708_s22 + $0x18] sm:$0xff] %v419_v53  ;;  %431 = vst [vmem:[%s708_s22 + $0x38] sm:$0xff] %v423_v54 }
  0xf9   : > { %425 = vst [vmem:[%s708_s22 + $0x8] sm:$0xff] %v417_v55  ;;  %429 = vst [vmem:[%s708_s22 + $0x28] sm:$0xff] %v421_v56 }
  0xfa PF: > { %s14_s15 = sadd.s32 1, %s623_s15  }
  0xfb   : > { %p11_p4 = scmp.ge.s32.totalorder %s14_s15, 4  }
  0xfd   :  { %13 = sbr.rel (!%p11_p4) target bundleno = 1 (0x1), region = 69 }

</bundles_post_ra>
